<compile_context>
chip_gen: v5e
topology: v5e:2x2
jax: 0.10.0
libtpu: 0.0.40
codegen_flags: <defaults>
</compile_context>

<pallas_src>
import functools

import jax
import jax.numpy as jnp
from jax import lax
from jax.experimental import pallas as pl
from jax.experimental.pallas import tpu as pltpu

EPS = 1e-5


def _layernorm(v, w, b):
    mu = jnp.mean(v, axis=-1, keepdims=True)
    var = jnp.mean((v - mu) ** 2, axis=-1, keepdims=True)
    return (v - mu) * lax.rsqrt(var + EPS) * w + b


def mamba_block_kernel(
    # streamed operand: (Lc, D) block (batch dim squeezed away)
    x_ref,
    # resident weights (whole arrays in VMEM, constant across the grid)
    ln1w_ref, ln1b_ref,          # (1, D), (1, D)
    convw_ref, convb_ref,        # (K, D), (1, D)
    xp_ref,                      # (D, R + 2N)   fused x_proj: [dt_low | B | C]
    dtpw_ref, dtpb_ref,          # (R, D), (1, D)
    negAT_ref,                   # (N, D)  = (-exp(A_log)).T  (host-precomputed, f32)
    opw_ref,                     # (D, D)
    ln2w_ref, ln2b_ref,          # (1, D), (1, D)
    guw_ref,                     # (D, 2H) fused [gate | up]
    dw_ref,                      # (H, D)
    # output
    o_ref,                       # (Lc, D)
    # scratch (persists across grid steps -> cross-chunk carries)
    pad_ref,                     # (Lc + K - 1, D)  conv window; rows [0:K-1] = history
    state_ref,                   # (N, D)           carried SSM state
    *,
    dt_rank,
):
    Lc, D = x_ref.shape
    K = convw_ref.shape[0]
    N = negAT_ref.shape[0]
    H = dw_ref.shape[0]
    R = dt_rank

    chunk = pl.program_id(1)

    # ---- reset carried state at the start of every sequence ----
    @pl.when(chunk == 0)
    def _():
        state_ref[...] = jnp.zeros_like(state_ref)
        pad_ref[0:K - 1, :] = jnp.zeros((K - 1, D), pad_ref.dtype)

    x = x_ref[...].astype(jnp.float32)                         # (Lc, D)

    # ---- norm1 ----
    xn = _layernorm(x, ln1w_ref[...], ln1b_ref[...])

    # ---- causal depthwise conv1d (rows [0:K-1] of pad_ref carry history) ----
    pad_ref[K - 1:K - 1 + Lc, :] = xn
    cw = convw_ref[...]
    acc = jnp.broadcast_to(convb_ref[...], (Lc, D))
    for k in range(K):                                         # K = 4, static
        acc = acc + pad_ref[k:k + Lc, :] * cw[k:k + 1, :]
    # hand the last K-1 normalized rows to the next chunk, staged from the xn
    # *value* (avoids the self-aliasing pad_ref copy flagged in review).
    pad_ref[0:K - 1, :] = xn[Lc - (K - 1):, :]
    xc = acc * jax.nn.sigmoid(acc)                             # SiLU, f32, (Lc, D)

    # ---- fused x_proj: one MXU push for [dt_low | B | C] ----
    xpw = xp_ref[...]
    xd = jnp.dot(xc.astype(xpw.dtype), xpw, preferred_element_type=jnp.float32)
    dt_low = xd[:, :R]
    Bm = xd[:, R:R + N]
    Cm = xd[:, R + N:R + 2 * N]
    dtw = dtpw_ref[...]
    dt = jax.nn.softplus(
        jnp.dot(dt_low.astype(dtw.dtype), dtw, preferred_element_type=jnp.float32)
        + dtpb_ref[...])                                       # (Lc, D)

    # ---- selective scan: per state index n, a log2(Lc)-sweep associative scan
    #      over the full (Lc, D) tile (Hillis-Steele).  No serial time loop. ----
    negAT = negAT_ref[...]
    dtxc = dt * xc
    state0 = state_ref[...]                                    # (N, D)
    rows = lax.broadcasted_iota(jnp.int32, (Lc, 1), 0)
    shifts = []
    dist = 1
    while dist < Lc:                                           # static, log2(Lc) masks
        shifts.append((dist, rows >= dist))
        dist *= 2

    y_ssm = jnp.zeros((Lc, D), jnp.float32)
    for n in range(N):                                         # static, iterations independent
        a = jnp.exp(dt * negAT[n:n + 1, :])                    # (Lc, D) discretized A
        b = dtxc * Bm[:, n:n + 1]                              # (Lc, D) discretized B*u
        for dd, m in shifts:
            # combine (a', b') at l-dd into (a, b) at l:  s -> a*(a'*s+b') + b
            b = a * jnp.where(m, pltpu.roll(b, shift=dd, axis=0), 0.0) + b
            a = a * jnp.where(m, pltpu.roll(a, shift=dd, axis=0), 1.0)
        s = a * state0[n:n + 1, :] + b                         # (Lc, D) states for this n
        state_ref[n:n + 1, :] = s[Lc - 1:Lc, :]                # carry to next chunk
        y_ssm = y_ssm + Cm[:, n:n + 1] * s                     # fused C-contraction

    opw = opw_ref[...]
    y = jnp.dot(y_ssm.astype(opw.dtype), opw, preferred_element_type=jnp.float32)

    # TODO(synk): dropout implemented as identity (eval-mode forward semantics).
    x1 = y + x                                                 # residual 1

    # ---- norm2 + fused Gated MLP ----
    xn2 = _layernorm(x1, ln2w_ref[...], ln2b_ref[...])
    guw = guw_ref[...]
    gu = jnp.dot(xn2.astype(guw.dtype), guw, preferred_element_type=jnp.float32)
    g = gu[:, :H]
    g = g * jax.nn.sigmoid(g)                                  # SiLU gate
    u = gu[:, H:]
    dw = dw_ref[...]
    mlp = jnp.dot((g * u).astype(dw.dtype), dw, preferred_element_type=jnp.float32)

    o_ref[...] = (mlp + x1).astype(o_ref.dtype)                # residual 2


def mamba_block(x, p, chunk_len=None, mxu_dtype=jnp.bfloat16):
    Bsz, L, D = x.shape
    K = p["conv_w"].shape[0]
    N = p["A_log"].shape[1]
    R = p["dtproj_wT"].shape[0]

    if chunk_len is None:
        chunk_len = min(L, 256)      # 256 fills the 256-deep MXU on v6e/v7x
    Lc = chunk_len
    assert L % Lc == 0, "seq_len must be divisible by the chunk length"
    assert Lc >= K - 1
    n_chunks = L // Lc

    # ---- host-side weight preprocessing ----
    negA_T = (-jnp.exp(p["A_log"])).T.astype(jnp.float32)          # (N, D)
    gu_w = jnp.concatenate([p["gate_wT"], p["up_wT"]], axis=1)     # (D, 2H)

    xp_w = p["xproj_wT"].astype(mxu_dtype)                         # fused (D, R+2N)
    dtp_w = p["dtproj_wT"].astype(mxu_dtype)
    op_w = p["outproj_wT"].astype(mxu_dtype)
    gu_w = gu_w.astype(mxu_dtype)
    dn_w = p["down_wT"].astype(mxu_dtype)

    # whole array resident in VMEM (unblocked => single copy, not re-streamed)
    wspec = pl.BlockSpec(memory_space=pltpu.MemorySpace.VMEM)
    io_spec = pl.BlockSpec((pl.Squeezed(), Lc, D), lambda b, c: (b, c, 0))

    kernel = functools.partial(mamba_block_kernel, dt_rank=R)

    return pl.pallas_call(
        kernel,
        out_shape=jax.ShapeDtypeStruct((Bsz, L, D), jnp.float32),
        grid=(Bsz, n_chunks),
        in_specs=[io_spec] + [wspec] * 13,
        out_specs=io_spec,
        scratch_shapes=[
            pltpu.VMEM((Lc + K - 1, D), jnp.float32),   # conv window + carried history
            pltpu.VMEM((N, D), jnp.float32),            # carried SSM state
        ],
        compiler_params=pltpu.CompilerParams(
            # TODO(synk): on v7x use CORE_PARALLEL on the batch axis only (never
            # the state-carrying chunk axis) to light up both TensorCores.
            dimension_semantics=("parallel", "arbitrary"),
            vmem_limit_bytes=48 * 1024 * 1024,
        ),
    )(
        x,
        p["ln1_w"], p["ln1_b"],
        p["conv_w"], p["conv_b"],
        xp_w,
        dtp_w, p["dtproj_b"],
        negA_T,
        op_w,
        p["ln2_w"], p["ln2_b"],
        gu_w, dn_w,
    )


def mamba_block_ref(x, p):
    """Pure-JAX reference mirroring the PyTorch forward (for sanity checking)."""
    Bsz, L, D = x.shape
    K = p["conv_w"].shape[0]
    N = p["A_log"].shape[1]
    R = p["dtproj_wT"].shape[0]

    xn = _layernorm(x, p["ln1_w"], p["ln1_b"])
    padded = jnp.pad(xn, ((0, 0), (K - 1, 0), (0, 0)))
    xc = jnp.broadcast_to(p["conv_b"][None], (Bsz, L, D))
    for k in range(K):
        xc = xc + padded[:, k:k + L, :] * p["conv_w"][k][None, None, :]
    xc = jax.nn.silu(xc)

    x_dbl = xc @ p["xproj_wT"]
    dt_low, Bm, Cm = x_dbl[..., :R], x_dbl[..., R:R + N], x_dbl[..., R + N:]
    dt = jax.nn.softplus(dt_low @ p["dtproj_wT"] + p["dtproj_b"])
    A = -jnp.exp(p["A_log"])
    A_disc = jnp.exp(dt[..., None] * A[None, None, :, :])    # (B, L, D, N)
    B_disc = (dt * xc)[..., None] * Bm[:, :, None, :]        # (B, L, D, N)

    def step(state, inp):
        Ad, Bd, c = inp
        state = Ad * state + Bd
        return state, jnp.sum(state * c[:, None, :], axis=-1)

    state0 = jnp.zeros((Bsz, D, N), jnp.float32)
    _, ys = lax.scan(step, state0,
                     (A_disc.transpose(1, 0, 2, 3),
                      B_disc.transpose(1, 0, 2, 3),
                      Cm.transpose(1, 0, 2)))
    y_ssm = ys.transpose(1, 0, 2)
    y = y_ssm @ p["outproj_wT"]
    x1 = y + x

    xn2 = _layernorm(x1, p["ln2_w"], p["ln2_b"])
    g = jax.nn.silu(xn2 @ p["gate_wT"])
    u = xn2 @ p["up_wT"]
    return (g * u) @ p["down_wT"] + x1


def make_params(key, d_model=32, d_state=8, dt_rank=8, d_conv=4, expand=2):
    H = d_model * expand
    ks = jax.random.split(key, 12)
    n = lambda k, s, sc=0.1: (jax.random.normal(k, s) * sc).astype(jnp.float32)
    dt_std = dt_rank ** -0.5
    return {
        "ln1_w": jnp.ones((1, d_model), jnp.float32),
        "ln1_b": jnp.zeros((1, d_model), jnp.float32),
        "conv_w": n(ks[0], (d_conv, d_model), 0.3),
        "conv_b": n(ks[1], (1, d_model), 0.1),
        "xproj_wT": n(ks[2], (d_model, dt_rank + 2 * d_state)),
        "dtproj_wT": jax.random.uniform(ks[3], (dt_rank, d_model),
                                        minval=-dt_std, maxval=dt_std).astype(jnp.float32),
        "dtproj_b": n(ks[4], (1, d_model), 0.05),
        "A_log": jnp.log(jnp.tile(jnp.arange(1, d_state + 1, dtype=jnp.float32),
                                  (d_model, 1))),
        "outproj_wT": n(ks[5], (d_model, d_model)),
        "ln2_w": jnp.ones((1, d_model), jnp.float32),
        "ln2_b": jnp.zeros((1, d_model), jnp.float32),
        "gate_wT": n(ks[6], (d_model, H)),
        "up_wT": n(ks[7], (d_model, H)),
        "down_wT": n(ks[8], (H, d_model)),
    }


if __name__ == "__main__":
    batch, seq_len, d_model = 2, 8, 32
    key = jax.random.PRNGKey(0)
    kx, kp = jax.random.split(key)
    x = jax.random.normal(kx, (batch, seq_len, d_model), dtype=jnp.float32)
    params = make_params(kp, d_model=d_model)

    ref = mamba_block_ref(x, params)

    # exact-parity run (MXU operands kept in f32)
    out_f32 = jax.block_until_ready(mamba_block(x, params, mxu_dtype=jnp.float32))
    assert out_f32.shape == (batch, seq_len, d_model)
    err32 = float(jnp.max(jnp.abs(out_f32 - ref)))
    assert jnp.allclose(out_f32, ref, rtol=2e-3, atol=2e-3), ("f32 max abs err", err32)

    # default perf path: bf16 MXU operands, f32 accumulation
    out_bf16 = jax.block_until_ready(mamba_block(x, params))
    errbf = float(jnp.max(jnp.abs(out_bf16 - ref)))
    assert jnp.allclose(out_bf16, ref, rtol=3e-2, atol=3e-2), ("bf16 max abs err", errbf)

    print("KERNEL_OK")
</pallas_src>

<mosaic_0001>
module attributes {stable_mosaic.version = 11 : i64} {
  func.func @mamba_block_kernel(%arg0: i32, %arg1: i32, %arg2: memref<1x8x32xf32, #tpu.memory_space<vmem>>, %arg3: memref<1x32xf32, #tpu.memory_space<vmem>>, %arg4: memref<1x32xf32, #tpu.memory_space<vmem>>, %arg5: memref<4x32xf32, #tpu.memory_space<vmem>>, %arg6: memref<1x32xf32, #tpu.memory_space<vmem>>, %arg7: memref<32x24xf32, #tpu.memory_space<vmem>>, %arg8: memref<8x32xf32, #tpu.memory_space<vmem>>, %arg9: memref<1x32xf32, #tpu.memory_space<vmem>>, %arg10: memref<8x32xf32, #tpu.memory_space<vmem>>, %arg11: memref<32x32xf32, #tpu.memory_space<vmem>>, %arg12: memref<1x32xf32, #tpu.memory_space<vmem>>, %arg13: memref<1x32xf32, #tpu.memory_space<vmem>>, %arg14: memref<32x128xf32, #tpu.memory_space<vmem>>, %arg15: memref<64x32xf32, #tpu.memory_space<vmem>>, %arg16: memref<1x8x32xf32, #tpu.memory_space<vmem>>, %arg17: memref<11x32xf32, #tpu.memory_space<vmem>>, %arg18: memref<8x32xf32, #tpu.memory_space<vmem>>) attributes {dimension_semantics = [#tpu.dimension_semantics<parallel>, #tpu.dimension_semantics<arbitrary>], iteration_bounds = array<i64: 2, 1>, scalar_prefetch = 0 : i64, scratch_operands = 2 : i64, tpu.core_type = #tpu.core_type<tc>, window_params = [{transform_indices = @transform_0, window_bounds = array<i64: 1, 8, 32>}, {pipeline_mode = #tpu.pipeline_mode<synchronous>, transform_indices = @transform_1, window_bounds = array<i64: 1, 32>}, {pipeline_mode = #tpu.pipeline_mode<synchronous>, transform_indices = @transform_2, window_bounds = array<i64: 1, 32>}, {pipeline_mode = #tpu.pipeline_mode<synchronous>, transform_indices = @transform_3, window_bounds = array<i64: 4, 32>}, {pipeline_mode = #tpu.pipeline_mode<synchronous>, transform_indices = @transform_4, window_bounds = array<i64: 1, 32>}, {pipeline_mode = #tpu.pipeline_mode<synchronous>, transform_indices = @transform_5, window_bounds = array<i64: 32, 24>}, {pipeline_mode = #tpu.pipeline_mode<synchronous>, transform_indices = @transform_6, window_bounds = array<i64: 8, 32>}, {pipeline_mode = #tpu.pipeline_mode<synchronous>, transform_indices = @transform_7, window_bounds = array<i64: 1, 32>}, {pipeline_mode = #tpu.pipeline_mode<synchronous>, transform_indices = @transform_8, window_bounds = array<i64: 8, 32>}, {pipeline_mode = #tpu.pipeline_mode<synchronous>, transform_indices = @transform_9, window_bounds = array<i64: 32, 32>}, {pipeline_mode = #tpu.pipeline_mode<synchronous>, transform_indices = @transform_10, window_bounds = array<i64: 1, 32>}, {pipeline_mode = #tpu.pipeline_mode<synchronous>, transform_indices = @transform_11, window_bounds = array<i64: 1, 32>}, {pipeline_mode = #tpu.pipeline_mode<synchronous>, transform_indices = @transform_12, window_bounds = array<i64: 32, 128>}, {pipeline_mode = #tpu.pipeline_mode<synchronous>, transform_indices = @transform_13, window_bounds = array<i64: 64, 32>}, {transform_indices = @transform_14, window_bounds = array<i64: 1, 8, 32>}]} {
    %c0_i32 = arith.constant 0 : i32
    %0 = arith.cmpi eq, %arg1, %c0_i32 : i32
    %1 = arith.extui %0 : i1 to i32
    %c0_i32_0 = arith.constant 0 : i32
    %2 = arith.cmpi ne, %1, %c0_i32_0 : i32
    scf.if %2 {
      %cst_170 = arith.constant 0.000000e+00 : f32
      %589 = vector.broadcast %cst_170 : f32 to vector<8x32xf32>
      %c0_171 = arith.constant 0 : index
      %c0_172 = arith.constant 0 : index
      %590 = vector.load %arg18[%c0_171, %c0_172] : memref<8x32xf32, #tpu.memory_space<vmem>>, vector<8x32xf32>
      tpu.vector_store %arg18[%c0_171, %c0_172], %589 {strides = array<i32>} : memref<8x32xf32, #tpu.memory_space<vmem>>, vector<8x32xf32>,
      %cst_173 = arith.constant 0.000000e+00 : f32
      %591 = vector.broadcast %cst_173 : f32 to vector<3x32xf32>
      %c0_174 = arith.constant 0 : index
      %c0_175 = arith.constant 0 : index
      %592 = vector.load %arg17[%c0_174, %c0_175] : memref<11x32xf32, #tpu.memory_space<vmem>>, vector<3x32xf32>
      tpu.vector_store %arg17[%c0_174, %c0_175], %591 {strides = array<i32>} : memref<11x32xf32, #tpu.memory_space<vmem>>, vector<3x32xf32>,
    } else {
    }
    %c0 = arith.constant 0 : index
    %c0_1 = arith.constant 0 : index
    %c0_2 = arith.constant 0 : index
    %3 = vector.load %arg2[%c0, %c0_1, %c0_2] : memref<1x8x32xf32, #tpu.memory_space<vmem>>, vector<1x8x32xf32>
    %4 = vector.shape_cast %3 : vector<1x8x32xf32> to vector<8x32xf32>
    %c0_3 = arith.constant 0 : index
    %c0_4 = arith.constant 0 : index
    %5 = vector.load %arg3[%c0_3, %c0_4] : memref<1x32xf32, #tpu.memory_space<vmem>>, vector<1x32xf32>
    %c0_5 = arith.constant 0 : index
    %c0_6 = arith.constant 0 : index
    %6 = vector.load %arg4[%c0_5, %c0_6] : memref<1x32xf32, #tpu.memory_space<vmem>>, vector<1x32xf32>
    %cst = arith.constant dense<0.000000e+00> : vector<8xf32>
    %7 = vector.multi_reduction <add>, %4, %cst [1] : vector<8x32xf32> to vector<8xf32>
    %8 = vector.shape_cast %7 : vector<8xf32> to vector<8x1xf32>
    %cst_7 = arith.constant 3.200000e+01 : f32
    %9 = vector.broadcast %cst_7 : f32 to vector<8x1xf32>
    %10 = arith.divf %8, %9 : vector<8x1xf32>
    %11 = vector.broadcast %10 : vector<8x1xf32> to vector<8x32xf32>
    %12 = arith.subf %4, %11 : vector<8x32xf32>
    %13 = arith.mulf %12, %12 : vector<8x32xf32>
    %cst_8 = arith.constant dense<0.000000e+00> : vector<8xf32>
    %14 = vector.multi_reduction <add>, %13, %cst_8 [1] : vector<8x32xf32> to vector<8xf32>
    %15 = vector.shape_cast %14 : vector<8xf32> to vector<8x1xf32>
    %cst_9 = arith.constant 3.200000e+01 : f32
    %16 = vector.broadcast %cst_9 : f32 to vector<8x1xf32>
    %17 = arith.divf %15, %16 : vector<8x1xf32>
    %18 = vector.broadcast %10 : vector<8x1xf32> to vector<8x32xf32>
    %19 = arith.subf %4, %18 : vector<8x32xf32>
    %cst_10 = arith.constant 9.99999974E-6 : f32
    %20 = vector.broadcast %cst_10 : f32 to vector<8x1xf32>
    %21 = arith.addf %17, %20 : vector<8x1xf32>
    %22 = math.rsqrt %21 : vector<8x1xf32>
    %23 = vector.broadcast %22 : vector<8x1xf32> to vector<8x32xf32>
    %24 = arith.mulf %19, %23 : vector<8x32xf32>
    %25 = vector.broadcast %5 : vector<1x32xf32> to vector<8x32xf32>
    %26 = arith.mulf %24, %25 : vector<8x32xf32>
    %27 = vector.broadcast %6 : vector<1x32xf32> to vector<8x32xf32>
    %28 = arith.addf %26, %27 : vector<8x32xf32>
    %c3 = arith.constant 3 : index
    %c0_11 = arith.constant 0 : index
    %29 = vector.load %arg17[%c3, %c0_11] : memref<11x32xf32, #tpu.memory_space<vmem>>, vector<8x32xf32>
    tpu.vector_store %arg17[%c3, %c0_11], %28 {strides = array<i32>} : memref<11x32xf32, #tpu.memory_space<vmem>>, vector<8x32xf32>,
    %c0_12 = arith.constant 0 : index
    %c0_13 = arith.constant 0 : index
    %30 = vector.load %arg5[%c0_12, %c0_13] : memref<4x32xf32, #tpu.memory_space<vmem>>, vector<4x32xf32>
    %c0_14 = arith.constant 0 : index
    %c0_15 = arith.constant 0 : index
    %31 = vector.load %arg6[%c0_14, %c0_15] : memref<1x32xf32, #tpu.memory_space<vmem>>, vector<1x32xf32>
    %32 = vector.shape_cast %31 : vector<1x32xf32> to vector<1x32xf32>
    %33 = vector.broadcast %32 : vector<1x32xf32> to vector<8x32xf32>
    %c0_16 = arith.constant 0 : index
    %c0_17 = arith.constant 0 : index
    %34 = vector.load %arg17[%c0_16, %c0_17] : memref<11x32xf32, #tpu.memory_space<vmem>>, vector<8x32xf32>
    %35 = vector.extract_strided_slice %30 {offsets = [0, 0], sizes = [1, 32], strides = [1, 1]} : vector<4x32xf32> to vector<1x32xf32>
    %36 = vector.broadcast %35 : vector<1x32xf32> to vector<8x32xf32>
    %37 = arith.mulf %34, %36 : vector<8x32xf32>
    %38 = arith.addf %33, %37 : vector<8x32xf32>
    %c1 = arith.constant 1 : index
    %c0_18 = arith.constant 0 : index
    %39 = vector.load %arg17[%c1, %c0_18] : memref<11x32xf32, #tpu.memory_space<vmem>>, vector<8x32xf32>
    %40 = vector.extract_strided_slice %30 {offsets = [1, 0], sizes = [1, 32], strides = [1, 1]} : vector<4x32xf32> to vector<1x32xf32>
    %41 = vector.broadcast %40 : vector<1x32xf32> to vector<8x32xf32>
    %42 = arith.mulf %39, %41 : vector<8x32xf32>
    %43 = arith.addf %38, %42 : vector<8x32xf32>
    %c2 = arith.constant 2 : index
    %c0_19 = arith.constant 0 : index
    %44 = vector.load %arg17[%c2, %c0_19] : memref<11x32xf32, #tpu.memory_space<vmem>>, vector<8x32xf32>
    %45 = vector.extract_strided_slice %30 {offsets = [2, 0], sizes = [1, 32], strides = [1, 1]} : vector<4x32xf32> to vector<1x32xf32>
    %46 = vector.broadcast %45 : vector<1x32xf32> to vector<8x32xf32>
    %47 = arith.mulf %44, %46 : vector<8x32xf32>
    %48 = arith.addf %43, %47 : vector<8x32xf32>
    %c3_20 = arith.constant 3 : index
    %c0_21 = arith.constant 0 : index
    %49 = vector.load %arg17[%c3_20, %c0_21] : memref<11x32xf32, #tpu.memory_space<vmem>>, vector<8x32xf32>
    %50 = vector.extract_strided_slice %30 {offsets = [3, 0], sizes = [1, 32], strides = [1, 1]} : vector<4x32xf32> to vector<1x32xf32>
    %51 = vector.broadcast %50 : vector<1x32xf32> to vector<8x32xf32>
    %52 = arith.mulf %49, %51 : vector<8x32xf32>
    %53 = arith.addf %48, %52 : vector<8x32xf32>
    %54 = vector.extract_strided_slice %28 {offsets = [5, 0], sizes = [3, 32], strides = [1, 1]} : vector<8x32xf32> to vector<3x32xf32>
    %c0_22 = arith.constant 0 : index
    %c0_23 = arith.constant 0 : index
    %55 = vector.load %arg17[%c0_22, %c0_23] : memref<11x32xf32, #tpu.memory_space<vmem>>, vector<3x32xf32>
    tpu.vector_store %arg17[%c0_22, %c0_23], %54 {strides = array<i32>} : memref<11x32xf32, #tpu.memory_space<vmem>>, vector<3x32xf32>,
    %56 = arith.negf %53 : vector<8x32xf32>
    %57 = math.exp %56 : vector<8x32xf32>
    %cst_24 = arith.constant 1.000000e+00 : f32
    %58 = vector.broadcast %cst_24 : f32 to vector<8x32xf32>
    %59 = arith.addf %58, %57 : vector<8x32xf32>
    %60 = arith.divf %58, %59 : vector<8x32xf32>
    %61 = arith.mulf %53, %60 : vector<8x32xf32>
    %c0_25 = arith.constant 0 : index
    %c0_26 = arith.constant 0 : index
    %62 = vector.load %arg7[%c0_25, %c0_26] : memref<32x24xf32, #tpu.memory_space<vmem>>, vector<32x24xf32>
    %cst_27 = arith.constant dense<0.000000e+00> : vector<8x24xf32>
    %63 = tpu.matmul %61, %62, %cst_27 {dimension_numbers = #tpu.dot_dimension_numbers<[1], [0], [0], [1], [0, 0, 1, 1], [], []>} : vector<8x32xf32>, vector<32x24xf32>, vector<8x24xf32> -> vector<8x24xf32>
    %64 = vector.extract_strided_slice %63 {offsets = [0, 0], sizes = [8, 8], strides = [1, 1]} : vector<8x24xf32> to vector<8x8xf32>
    %65 = vector.extract_strided_slice %63 {offsets = [0, 8], sizes = [8, 8], strides = [1, 1]} : vector<8x24xf32> to vector<8x8xf32>
    %66 = vector.extract_strided_slice %63 {offsets = [0, 16], sizes = [8, 8], strides = [1, 1]} : vector<8x24xf32> to vector<8x8xf32>
    %c0_28 = arith.constant 0 : index
    %c0_29 = arith.constant 0 : index
    %67 = vector.load %arg8[%c0_28, %c0_29] : memref<8x32xf32, #tpu.memory_space<vmem>>, vector<8x32xf32>
    %cst_30 = arith.constant dense<0.000000e+00> : vector<8x32xf32>
    %68 = tpu.matmul %64, %67, %cst_30 {dimension_numbers = #tpu.dot_dimension_numbers<[1], [0], [0], [1], [0, 0, 1, 1], [], []>} : vector<8x8xf32>, vector<8x32xf32>, vector<8x32xf32> -> vector<8x32xf32>
    %c0_31 = arith.constant 0 : index
    %c0_32 = arith.constant 0 : index
    %69 = vector.load %arg9[%c0_31, %c0_32] : memref<1x32xf32, #tpu.memory_space<vmem>>, vector<1x32xf32>
    %70 = vector.broadcast %69 : vector<1x32xf32> to vector<8x32xf32>
    %71 = arith.addf %68, %70 : vector<8x32xf32>
    %cst_33 = arith.constant 0.000000e+00 : f32
    %72 = vector.broadcast %cst_33 : f32 to vector<8x32xf32>
    %73 = arith.maximumf %71, %72 : vector<8x32xf32>
    %74 = vector.broadcast %cst_33 : f32 to vector<8x32xf32>
    %75 = arith.subf %71, %74 : vector<8x32xf32>
    %76 = arith.cmpf one, %75, %75 : vector<8x32xf32>
    %77 = vector.broadcast %cst_33 : f32 to vector<8x32xf32>
    %78 = arith.addf %71, %77 : vector<8x32xf32>
    %79 = math.absf %75 : vector<8x32xf32>
    %cst_34 = arith.constant 0.000000e+00 : f32
    %80 = vector.broadcast %cst_34 : f32 to vector<8x32xf32>
    %81 = arith.subf %80, %79 : vector<8x32xf32>
    %82 = math.exp %81 : vector<8x32xf32>
    %83 = math.log1p %82 : vector<8x32xf32>
    %84 = arith.addf %73, %83 : vector<8x32xf32>
    %85 = arith.select %76, %78, %84 : vector<8x32xi1>, vector<8x32xf32>
    %c0_35 = arith.constant 0 : index
    %c0_36 = arith.constant 0 : index
    %86 = vector.load %arg10[%c0_35, %c0_36] : memref<8x32xf32, #tpu.memory_space<vmem>>, vector<8x32xf32>
    %87 = arith.mulf %85, %61 : vector<8x32xf32>
    %c0_37 = arith.constant 0 : index
    %c0_38 = arith.constant 0 : index
    %88 = vector.load %arg18[%c0_37, %c0_38] : memref<8x32xf32, #tpu.memory_space<vmem>>, vector<8x32xf32>
    %89 = tpu.iota {dimensions = array<i32: 0>} : vector<8x1xi32>
    %c1_i32 = arith.constant 1 : i32
    %90 = vector.broadcast %c1_i32 : i32 to vector<8x1xi32>
    %91 = arith.cmpi sge, %89, %90 : vector<8x1xi32>
    %c2_i32 = arith.constant 2 : i32
    %92 = vector.broadcast %c2_i32 : i32 to vector<8x1xi32>
    %93 = arith.cmpi sge, %89, %92 : vector<8x1xi32>
    %c4_i32 = arith.constant 4 : i32
    %94 = vector.broadcast %c4_i32 : i32 to vector<8x1xi32>
    %95 = arith.cmpi sge, %89, %94 : vector<8x1xi32>
    %cst_39 = arith.constant 0.000000e+00 : f32
    %96 = vector.broadcast %cst_39 : f32 to vector<8x32xf32>
    %97 = vector.extract_strided_slice %86 {offsets = [0, 0], sizes = [1, 32], strides = [1, 1]} : vector<8x32xf32> to vector<1x32xf32>
    %98 = vector.broadcast %97 : vector<1x32xf32> to vector<8x32xf32>
    %99 = arith.mulf %85, %98 : vector<8x32xf32>
    %100 = math.exp %99 : vector<8x32xf32>
    %101 = vector.extract_strided_slice %65 {offsets = [0, 0], sizes = [8, 1], strides = [1, 1]} : vector<8x8xf32> to vector<8x1xf32>
    %102 = vector.broadcast %101 : vector<8x1xf32> to vector<8x32xf32>
    %103 = arith.mulf %87, %102 : vector<8x32xf32>
    %c1_i32_40 = arith.constant 1 : i32
    %104 = tpu.dynamic_rotate %103 by %c1_i32_40 dim 0 : vector<8x32xf32>, i32 -> vector<8x32xf32>
    %cst_41 = arith.constant 0.000000e+00 : f32
    %105 = vector.shape_cast %91 : vector<8x1xi1> to vector<8x1xi1>
    %106 = vector.broadcast %105 : vector<8x1xi1> to vector<8x32xi1>
    %107 = vector.broadcast %cst_41 : f32 to vector<8x32xf32>
    %108 = arith.select %106, %104, %107 : vector<8x32xi1>, vector<8x32xf32>
    %109 = arith.mulf %100, %108 : vector<8x32xf32>
    %110 = arith.addf %109, %103 : vector<8x32xf32>
    %c1_i32_42 = arith.constant 1 : i32
    %111 = tpu.dynamic_rotate %100 by %c1_i32_42 dim 0 : vector<8x32xf32>, i32 -> vector<8x32xf32>
    %cst_43 = arith.constant 1.000000e+00 : f32
    %112 = vector.shape_cast %91 : vector<8x1xi1> to vector<8x1xi1>
    %113 = vector.broadcast %112 : vector<8x1xi1> to vector<8x32xi1>
    %114 = vector.broadcast %cst_43 : f32 to vector<8x32xf32>
    %115 = arith.select %113, %111, %114 : vector<8x32xi1>, vector<8x32xf32>
    %116 = arith.mulf %100, %115 : vector<8x32xf32>
    %c2_i32_44 = arith.constant 2 : i32
    %117 = tpu.dynamic_rotate %110 by %c2_i32_44 dim 0 : vector<8x32xf32>, i32 -> vector<8x32xf32>
    %cst_45 = arith.constant 0.000000e+00 : f32
    %118 = vector.shape_cast %93 : vector<8x1xi1> to vector<8x1xi1>
    %119 = vector.broadcast %118 : vector<8x1xi1> to vector<8x32xi1>
    %120 = vector.broadcast %cst_45 : f32 to vector<8x32xf32>
    %121 = arith.select %119, %117, %120 : vector<8x32xi1>, vector<8x32xf32>
    %122 = arith.mulf %116, %121 : vector<8x32xf32>
    %123 = arith.addf %122, %110 : vector<8x32xf32>
    %c2_i32_46 = arith.constant 2 : i32
    %124 = tpu.dynamic_rotate %116 by %c2_i32_46 dim 0 : vector<8x32xf32>, i32 -> vector<8x32xf32>
    %cst_47 = arith.constant 1.000000e+00 : f32
    %125 = vector.shape_cast %93 : vector<8x1xi1> to vector<8x1xi1>
    %126 = vector.broadcast %125 : vector<8x1xi1> to vector<8x32xi1>
    %127 = vector.broadcast %cst_47 : f32 to vector<8x32xf32>
    %128 = arith.select %126, %124, %127 : vector<8x32xi1>, vector<8x32xf32>
    %129 = arith.mulf %116, %128 : vector<8x32xf32>
    %c4_i32_48 = arith.constant 4 : i32
    %130 = tpu.dynamic_rotate %123 by %c4_i32_48 dim 0 : vector<8x32xf32>, i32 -> vector<8x32xf32>
    %cst_49 = arith.constant 0.000000e+00 : f32
    %131 = vector.shape_cast %95 : vector<8x1xi1> to vector<8x1xi1>
    %132 = vector.broadcast %131 : vector<8x1xi1> to vector<8x32xi1>
    %133 = vector.broadcast %cst_49 : f32 to vector<8x32xf32>
    %134 = arith.select %132, %130, %133 : vector<8x32xi1>, vector<8x32xf32>
    %135 = arith.mulf %129, %134 : vector<8x32xf32>
    %136 = arith.addf %135, %123 : vector<8x32xf32>
    %c4_i32_50 = arith.constant 4 : i32
    %137 = tpu.dynamic_rotate %129 by %c4_i32_50 dim 0 : vector<8x32xf32>, i32 -> vector<8x32xf32>
    %cst_51 = arith.constant 1.000000e+00 : f32
    %138 = vector.shape_cast %95 : vector<8x1xi1> to vector<8x1xi1>
    %139 = vector.broadcast %138 : vector<8x1xi1> to vector<8x32xi1>
    %140 = vector.broadcast %cst_51 : f32 to vector<8x32xf32>
    %141 = arith.select %139, %137, %140 : vector<8x32xi1>, vector<8x32xf32>
    %142 = arith.mulf %129, %141 : vector<8x32xf32>
    %143 = vector.extract_strided_slice %88 {offsets = [0, 0], sizes = [1, 32], strides = [1, 1]} : vector<8x32xf32> to vector<1x32xf32>
    %144 = vector.broadcast %143 : vector<1x32xf32> to vector<8x32xf32>
    %145 = arith.mulf %142, %144 : vector<8x32xf32>
    %146 = arith.addf %145, %136 : vector<8x32xf32>
    %147 = vector.extract_strided_slice %146 {offsets = [7, 0], sizes = [1, 32], strides = [1, 1]} : vector<8x32xf32> to vector<1x32xf32>
    %c0_52 = arith.constant 0 : index
    %c0_53 = arith.constant 0 : index
    %148 = vector.load %arg18[%c0_52, %c0_53] : memref<8x32xf32, #tpu.memory_space<vmem>>, vector<1x32xf32>
    tpu.vector_store %arg18[%c0_52, %c0_53], %147 {strides = array<i32>} : memref<8x32xf32, #tpu.memory_space<vmem>>, vector<1x32xf32>,
    %149 = vector.extract_strided_slice %66 {offsets = [0, 0], sizes = [8, 1], strides = [1, 1]} : vector<8x8xf32> to vector<8x1xf32>
    %150 = vector.broadcast %149 : vector<8x1xf32> to vector<8x32xf32>
    %151 = arith.mulf %150, %146 : vector<8x32xf32>
    %152 = arith.addf %96, %151 : vector<8x32xf32>
    %153 = vector.extract_strided_slice %86 {offsets = [1, 0], sizes = [1, 32], strides = [1, 1]} : vector<8x32xf32> to vector<1x32xf32>
    %154 = vector.broadcast %153 : vector<1x32xf32> to vector<8x32xf32>
    %155 = arith.mulf %85, %154 : vector<8x32xf32>
    %156 = math.exp %155 : vector<8x32xf32>
    %157 = vector.extract_strided_slice %65 {offsets = [0, 1], sizes = [8, 1], strides = [1, 1]} : vector<8x8xf32> to vector<8x1xf32>
    %158 = vector.broadcast %157 : vector<8x1xf32> to vector<8x32xf32>
    %159 = arith.mulf %87, %158 : vector<8x32xf32>
    %c1_i32_54 = arith.constant 1 : i32
    %160 = tpu.dynamic_rotate %159 by %c1_i32_54 dim 0 : vector<8x32xf32>, i32 -> vector<8x32xf32>
    %cst_55 = arith.constant 0.000000e+00 : f32
    %161 = vector.shape_cast %91 : vector<8x1xi1> to vector<8x1xi1>
    %162 = vector.broadcast %161 : vector<8x1xi1> to vector<8x32xi1>
    %163 = vector.broadcast %cst_55 : f32 to vector<8x32xf32>
    %164 = arith.select %162, %160, %163 : vector<8x32xi1>, vector<8x32xf32>
    %165 = arith.mulf %156, %164 : vector<8x32xf32>
    %166 = arith.addf %165, %159 : vector<8x32xf32>
    %c1_i32_56 = arith.constant 1 : i32
    %167 = tpu.dynamic_rotate %156 by %c1_i32_56 dim 0 : vector<8x32xf32>, i32 -> vector<8x32xf32>
    %cst_57 = arith.constant 1.000000e+00 : f32
    %168 = vector.shape_cast %91 : vector<8x1xi1> to vector<8x1xi1>
    %169 = vector.broadcast %168 : vector<8x1xi1> to vector<8x32xi1>
    %170 = vector.broadcast %cst_57 : f32 to vector<8x32xf32>
    %171 = arith.select %169, %167, %170 : vector<8x32xi1>, vector<8x32xf32>
    %172 = arith.mulf %156, %171 : vector<8x32xf32>
    %c2_i32_58 = arith.constant 2 : i32
    %173 = tpu.dynamic_rotate %166 by %c2_i32_58 dim 0 : vector<8x32xf32>, i32 -> vector<8x32xf32>
    %cst_59 = arith.constant 0.000000e+00 : f32
    %174 = vector.shape_cast %93 : vector<8x1xi1> to vector<8x1xi1>
    %175 = vector.broadcast %174 : vector<8x1xi1> to vector<8x32xi1>
    %176 = vector.broadcast %cst_59 : f32 to vector<8x32xf32>
    %177 = arith.select %175, %173, %176 : vector<8x32xi1>, vector<8x32xf32>
    %178 = arith.mulf %172, %177 : vector<8x32xf32>
    %179 = arith.addf %178, %166 : vector<8x32xf32>
    %c2_i32_60 = arith.constant 2 : i32
    %180 = tpu.dynamic_rotate %172 by %c2_i32_60 dim 0 : vector<8x32xf32>, i32 -> vector<8x32xf32>
    %cst_61 = arith.constant 1.000000e+00 : f32
    %181 = vector.shape_cast %93 : vector<8x1xi1> to vector<8x1xi1>
    %182 = vector.broadcast %181 : vector<8x1xi1> to vector<8x32xi1>
    %183 = vector.broadcast %cst_61 : f32 to vector<8x32xf32>
    %184 = arith.select %182, %180, %183 : vector<8x32xi1>, vector<8x32xf32>
    %185 = arith.mulf %172, %184 : vector<8x32xf32>
    %c4_i32_62 = arith.constant 4 : i32
    %186 = tpu.dynamic_rotate %179 by %c4_i32_62 dim 0 : vector<8x32xf32>, i32 -> vector<8x32xf32>
    %cst_63 = arith.constant 0.000000e+00 : f32
    %187 = vector.shape_cast %95 : vector<8x1xi1> to vector<8x1xi1>
    %188 = vector.broadcast %187 : vector<8x1xi1> to vector<8x32xi1>
    %189 = vector.broadcast %cst_63 : f32 to vector<8x32xf32>
    %190 = arith.select %188, %186, %189 : vector<8x32xi1>, vector<8x32xf32>
    %191 = arith.mulf %185, %190 : vector<8x32xf32>
    %192 = arith.addf %191, %179 : vector<8x32xf32>
    %c4_i32_64 = arith.constant 4 : i32
    %193 = tpu.dynamic_rotate %185 by %c4_i32_64 dim 0 : vector<8x32xf32>, i32 -> vector<8x32xf32>
    %cst_65 = arith.constant 1.000000e+00 : f32
    %194 = vector.shape_cast %95 : vector<8x1xi1> to vector<8x1xi1>
    %195 = vector.broadcast %194 : vector<8x1xi1> to vector<8x32xi1>
    %196 = vector.broadcast %cst_65 : f32 to vector<8x32xf32>
    %197 = arith.select %195, %193, %196 : vector<8x32xi1>, vector<8x32xf32>
    %198 = arith.mulf %185, %197 : vector<8x32xf32>
    %199 = vector.extract_strided_slice %88 {offsets = [1, 0], sizes = [1, 32], strides = [1, 1]} : vector<8x32xf32> to vector<1x32xf32>
    %200 = vector.broadcast %199 : vector<1x32xf32> to vector<8x32xf32>
    %201 = arith.mulf %198, %200 : vector<8x32xf32>
    %202 = arith.addf %201, %192 : vector<8x32xf32>
    %203 = vector.extract_strided_slice %202 {offsets = [7, 0], sizes = [1, 32], strides = [1, 1]} : vector<8x32xf32> to vector<1x32xf32>
    %c1_66 = arith.constant 1 : index
    %c0_67 = arith.constant 0 : index
    %204 = vector.load %arg18[%c1_66, %c0_67] : memref<8x32xf32, #tpu.memory_space<vmem>>, vector<1x32xf32>
    tpu.vector_store %arg18[%c1_66, %c0_67], %203 {strides = array<i32>} : memref<8x32xf32, #tpu.memory_space<vmem>>, vector<1x32xf32>,
    %205 = vector.extract_strided_slice %66 {offsets = [0, 1], sizes = [8, 1], strides = [1, 1]} : vector<8x8xf32> to vector<8x1xf32>
    %206 = vector.broadcast %205 : vector<8x1xf32> to vector<8x32xf32>
    %207 = arith.mulf %206, %202 : vector<8x32xf32>
    %208 = arith.addf %152, %207 : vector<8x32xf32>
    %209 = vector.extract_strided_slice %86 {offsets = [2, 0], sizes = [1, 32], strides = [1, 1]} : vector<8x32xf32> to vector<1x32xf32>
    %210 = vector.broadcast %209 : vector<1x32xf32> to vector<8x32xf32>
    %211 = arith.mulf %85, %210 : vector<8x32xf32>
    %212 = math.exp %211 : vector<8x32xf32>
    %213 = vector.extract_strided_slice %65 {offsets = [0, 2], sizes = [8, 1], strides = [1, 1]} : vector<8x8xf32> to vector<8x1xf32>
    %214 = vector.broadcast %213 : vector<8x1xf32> to vector<8x32xf32>
    %215 = arith.mulf %87, %214 : vector<8x32xf32>
    %c1_i32_68 = arith.constant 1 : i32
    %216 = tpu.dynamic_rotate %215 by %c1_i32_68 dim 0 : vector<8x32xf32>, i32 -> vector<8x32xf32>
    %cst_69 = arith.constant 0.000000e+00 : f32
    %217 = vector.shape_cast %91 : vector<8x1xi1> to vector<8x1xi1>
    %218 = vector.broadcast %217 : vector<8x1xi1> to vector<8x32xi1>
    %219 = vector.broadcast %cst_69 : f32 to vector<8x32xf32>
    %220 = arith.select %218, %216, %219 : vector<8x32xi1>, vector<8x32xf32>
    %221 = arith.mulf %212, %220 : vector<8x32xf32>
    %222 = arith.addf %221, %215 : vector<8x32xf32>
    %c1_i32_70 = arith.constant 1 : i32
    %223 = tpu.dynamic_rotate %212 by %c1_i32_70 dim 0 : vector<8x32xf32>, i32 -> vector<8x32xf32>
    %cst_71 = arith.constant 1.000000e+00 : f32
    %224 = vector.shape_cast %91 : vector<8x1xi1> to vector<8x1xi1>
    %225 = vector.broadcast %224 : vector<8x1xi1> to vector<8x32xi1>
    %226 = vector.broadcast %cst_71 : f32 to vector<8x32xf32>
    %227 = arith.select %225, %223, %226 : vector<8x32xi1>, vector<8x32xf32>
    %228 = arith.mulf %212, %227 : vector<8x32xf32>
    %c2_i32_72 = arith.constant 2 : i32
    %229 = tpu.dynamic_rotate %222 by %c2_i32_72 dim 0 : vector<8x32xf32>, i32 -> vector<8x32xf32>
    %cst_73 = arith.constant 0.000000e+00 : f32
    %230 = vector.shape_cast %93 : vector<8x1xi1> to vector<8x1xi1>
    %231 = vector.broadcast %230 : vector<8x1xi1> to vector<8x32xi1>
    %232 = vector.broadcast %cst_73 : f32 to vector<8x32xf32>
    %233 = arith.select %231, %229, %232 : vector<8x32xi1>, vector<8x32xf32>
    %234 = arith.mulf %228, %233 : vector<8x32xf32>
    %235 = arith.addf %234, %222 : vector<8x32xf32>
    %c2_i32_74 = arith.constant 2 : i32
    %236 = tpu.dynamic_rotate %228 by %c2_i32_74 dim 0 : vector<8x32xf32>, i32 -> vector<8x32xf32>
    %cst_75 = arith.constant 1.000000e+00 : f32
    %237 = vector.shape_cast %93 : vector<8x1xi1> to vector<8x1xi1>
    %238 = vector.broadcast %237 : vector<8x1xi1> to vector<8x32xi1>
    %239 = vector.broadcast %cst_75 : f32 to vector<8x32xf32>
    %240 = arith.select %238, %236, %239 : vector<8x32xi1>, vector<8x32xf32>
    %241 = arith.mulf %228, %240 : vector<8x32xf32>
    %c4_i32_76 = arith.constant 4 : i32
    %242 = tpu.dynamic_rotate %235 by %c4_i32_76 dim 0 : vector<8x32xf32>, i32 -> vector<8x32xf32>
    %cst_77 = arith.constant 0.000000e+00 : f32
    %243 = vector.shape_cast %95 : vector<8x1xi1> to vector<8x1xi1>
    %244 = vector.broadcast %243 : vector<8x1xi1> to vector<8x32xi1>
    %245 = vector.broadcast %cst_77 : f32 to vector<8x32xf32>
    %246 = arith.select %244, %242, %245 : vector<8x32xi1>, vector<8x32xf32>
    %247 = arith.mulf %241, %246 : vector<8x32xf32>
    %248 = arith.addf %247, %235 : vector<8x32xf32>
    %c4_i32_78 = arith.constant 4 : i32
    %249 = tpu.dynamic_rotate %241 by %c4_i32_78 dim 0 : vector<8x32xf32>, i32 -> vector<8x32xf32>
    %cst_79 = arith.constant 1.000000e+00 : f32
    %250 = vector.shape_cast %95 : vector<8x1xi1> to vector<8x1xi1>
    %251 = vector.broadcast %250 : vector<8x1xi1> to vector<8x32xi1>
    %252 = vector.broadcast %cst_79 : f32 to vector<8x32xf32>
    %253 = arith.select %251, %249, %252 : vector<8x32xi1>, vector<8x32xf32>
    %254 = arith.mulf %241, %253 : vector<8x32xf32>
    %255 = vector.extract_strided_slice %88 {offsets = [2, 0], sizes = [1, 32], strides = [1, 1]} : vector<8x32xf32> to vector<1x32xf32>
    %256 = vector.broadcast %255 : vector<1x32xf32> to vector<8x32xf32>
    %257 = arith.mulf %254, %256 : vector<8x32xf32>
    %258 = arith.addf %257, %248 : vector<8x32xf32>
    %259 = vector.extract_strided_slice %258 {offsets = [7, 0], sizes = [1, 32], strides = [1, 1]} : vector<8x32xf32> to vector<1x32xf32>
    %c2_80 = arith.constant 2 : index
    %c0_81 = arith.constant 0 : index
    %260 = vector.load %arg18[%c2_80, %c0_81] : memref<8x32xf32, #tpu.memory_space<vmem>>, vector<1x32xf32>
    tpu.vector_store %arg18[%c2_80, %c0_81], %259 {strides = array<i32>} : memref<8x32xf32, #tpu.memory_space<vmem>>, vector<1x32xf32>,
    %261 = vector.extract_strided_slice %66 {offsets = [0, 2], sizes = [8, 1], strides = [1, 1]} : vector<8x8xf32> to vector<8x1xf32>
    %262 = vector.broadcast %261 : vector<8x1xf32> to vector<8x32xf32>
    %263 = arith.mulf %262, %258 : vector<8x32xf32>
    %264 = arith.addf %208, %263 : vector<8x32xf32>
    %265 = vector.extract_strided_slice %86 {offsets = [3, 0], sizes = [1, 32], strides = [1, 1]} : vector<8x32xf32> to vector<1x32xf32>
    %266 = vector.broadcast %265 : vector<1x32xf32> to vector<8x32xf32>
    %267 = arith.mulf %85, %266 : vector<8x32xf32>
    %268 = math.exp %267 : vector<8x32xf32>
    %269 = vector.extract_strided_slice %65 {offsets = [0, 3], sizes = [8, 1], strides = [1, 1]} : vector<8x8xf32> to vector<8x1xf32>
    %270 = vector.broadcast %269 : vector<8x1xf32> to vector<8x32xf32>
    %271 = arith.mulf %87, %270 : vector<8x32xf32>
    %c1_i32_82 = arith.constant 1 : i32
    %272 = tpu.dynamic_rotate %271 by %c1_i32_82 dim 0 : vector<8x32xf32>, i32 -> vector<8x32xf32>
    %cst_83 = arith.constant 0.000000e+00 : f32
    %273 = vector.shape_cast %91 : vector<8x1xi1> to vector<8x1xi1>
    %274 = vector.broadcast %273 : vector<8x1xi1> to vector<8x32xi1>
    %275 = vector.broadcast %cst_83 : f32 to vector<8x32xf32>
    %276 = arith.select %274, %272, %275 : vector<8x32xi1>, vector<8x32xf32>
    %277 = arith.mulf %268, %276 : vector<8x32xf32>
    %278 = arith.addf %277, %271 : vector<8x32xf32>
    %c1_i32_84 = arith.constant 1 : i32
    %279 = tpu.dynamic_rotate %268 by %c1_i32_84 dim 0 : vector<8x32xf32>, i32 -> vector<8x32xf32>
    %cst_85 = arith.constant 1.000000e+00 : f32
    %280 = vector.shape_cast %91 : vector<8x1xi1> to vector<8x1xi1>
    %281 = vector.broadcast %280 : vector<8x1xi1> to vector<8x32xi1>
    %282 = vector.broadcast %cst_85 : f32 to vector<8x32xf32>
    %283 = arith.select %281, %279, %282 : vector<8x32xi1>, vector<8x32xf32>
    %284 = arith.mulf %268, %283 : vector<8x32xf32>
    %c2_i32_86 = arith.constant 2 : i32
    %285 = tpu.dynamic_rotate %278 by %c2_i32_86 dim 0 : vector<8x32xf32>, i32 -> vector<8x32xf32>
    %cst_87 = arith.constant 0.000000e+00 : f32
    %286 = vector.shape_cast %93 : vector<8x1xi1> to vector<8x1xi1>
    %287 = vector.broadcast %286 : vector<8x1xi1> to vector<8x32xi1>
    %288 = vector.broadcast %cst_87 : f32 to vector<8x32xf32>
    %289 = arith.select %287, %285, %288 : vector<8x32xi1>, vector<8x32xf32>
    %290 = arith.mulf %284, %289 : vector<8x32xf32>
    %291 = arith.addf %290, %278 : vector<8x32xf32>
    %c2_i32_88 = arith.constant 2 : i32
    %292 = tpu.dynamic_rotate %284 by %c2_i32_88 dim 0 : vector<8x32xf32>, i32 -> vector<8x32xf32>
    %cst_89 = arith.constant 1.000000e+00 : f32
    %293 = vector.shape_cast %93 : vector<8x1xi1> to vector<8x1xi1>
    %294 = vector.broadcast %293 : vector<8x1xi1> to vector<8x32xi1>
    %295 = vector.broadcast %cst_89 : f32 to vector<8x32xf32>
    %296 = arith.select %294, %292, %295 : vector<8x32xi1>, vector<8x32xf32>
    %297 = arith.mulf %284, %296 : vector<8x32xf32>
    %c4_i32_90 = arith.constant 4 : i32
    %298 = tpu.dynamic_rotate %291 by %c4_i32_90 dim 0 : vector<8x32xf32>, i32 -> vector<8x32xf32>
    %cst_91 = arith.constant 0.000000e+00 : f32
    %299 = vector.shape_cast %95 : vector<8x1xi1> to vector<8x1xi1>
    %300 = vector.broadcast %299 : vector<8x1xi1> to vector<8x32xi1>
    %301 = vector.broadcast %cst_91 : f32 to vector<8x32xf32>
    %302 = arith.select %300, %298, %301 : vector<8x32xi1>, vector<8x32xf32>
    %303 = arith.mulf %297, %302 : vector<8x32xf32>
    %304 = arith.addf %303, %291 : vector<8x32xf32>
    %c4_i32_92 = arith.constant 4 : i32
    %305 = tpu.dynamic_rotate %297 by %c4_i32_92 dim 0 : vector<8x32xf32>, i32 -> vector<8x32xf32>
    %cst_93 = arith.constant 1.000000e+00 : f32
    %306 = vector.shape_cast %95 : vector<8x1xi1> to vector<8x1xi1>
    %307 = vector.broadcast %306 : vector<8x1xi1> to vector<8x32xi1>
    %308 = vector.broadcast %cst_93 : f32 to vector<8x32xf32>
    %309 = arith.select %307, %305, %308 : vector<8x32xi1>, vector<8x32xf32>
    %310 = arith.mulf %297, %309 : vector<8x32xf32>
    %311 = vector.extract_strided_slice %88 {offsets = [3, 0], sizes = [1, 32], strides = [1, 1]} : vector<8x32xf32> to vector<1x32xf32>
    %312 = vector.broadcast %311 : vector<1x32xf32> to vector<8x32xf32>
    %313 = arith.mulf %310, %312 : vector<8x32xf32>
    %314 = arith.addf %313, %304 : vector<8x32xf32>
    %315 = vector.extract_strided_slice %314 {offsets = [7, 0], sizes = [1, 32], strides = [1, 1]} : vector<8x32xf32> to vector<1x32xf32>
    %c3_94 = arith.constant 3 : index
    %c0_95 = arith.constant 0 : index
    %316 = vector.load %arg18[%c3_94, %c0_95] : memref<8x32xf32, #tpu.memory_space<vmem>>, vector<1x32xf32>
    tpu.vector_store %arg18[%c3_94, %c0_95], %315 {strides = array<i32>} : memref<8x32xf32, #tpu.memory_space<vmem>>, vector<1x32xf32>,
    %317 = vector.extract_strided_slice %66 {offsets = [0, 3], sizes = [8, 1], strides = [1, 1]} : vector<8x8xf32> to vector<8x1xf32>
    %318 = vector.broadcast %317 : vector<8x1xf32> to vector<8x32xf32>
    %319 = arith.mulf %318, %314 : vector<8x32xf32>
    %320 = arith.addf %264, %319 : vector<8x32xf32>
    %321 = vector.extract_strided_slice %86 {offsets = [4, 0], sizes = [1, 32], strides = [1, 1]} : vector<8x32xf32> to vector<1x32xf32>
    %322 = vector.broadcast %321 : vector<1x32xf32> to vector<8x32xf32>
    %323 = arith.mulf %85, %322 : vector<8x32xf32>
    %324 = math.exp %323 : vector<8x32xf32>
    %325 = vector.extract_strided_slice %65 {offsets = [0, 4], sizes = [8, 1], strides = [1, 1]} : vector<8x8xf32> to vector<8x1xf32>
    %326 = vector.broadcast %325 : vector<8x1xf32> to vector<8x32xf32>
    %327 = arith.mulf %87, %326 : vector<8x32xf32>
    %c1_i32_96 = arith.constant 1 : i32
    %328 = tpu.dynamic_rotate %327 by %c1_i32_96 dim 0 : vector<8x32xf32>, i32 -> vector<8x32xf32>
    %cst_97 = arith.constant 0.000000e+00 : f32
    %329 = vector.shape_cast %91 : vector<8x1xi1> to vector<8x1xi1>
    %330 = vector.broadcast %329 : vector<8x1xi1> to vector<8x32xi1>
    %331 = vector.broadcast %cst_97 : f32 to vector<8x32xf32>
    %332 = arith.select %330, %328, %331 : vector<8x32xi1>, vector<8x32xf32>
    %333 = arith.mulf %324, %332 : vector<8x32xf32>
    %334 = arith.addf %333, %327 : vector<8x32xf32>
    %c1_i32_98 = arith.constant 1 : i32
    %335 = tpu.dynamic_rotate %324 by %c1_i32_98 dim 0 : vector<8x32xf32>, i32 -> vector<8x32xf32>
    %cst_99 = arith.constant 1.000000e+00 : f32
    %336 = vector.shape_cast %91 : vector<8x1xi1> to vector<8x1xi1>
    %337 = vector.broadcast %336 : vector<8x1xi1> to vector<8x32xi1>
    %338 = vector.broadcast %cst_99 : f32 to vector<8x32xf32>
    %339 = arith.select %337, %335, %338 : vector<8x32xi1>, vector<8x32xf32>
    %340 = arith.mulf %324, %339 : vector<8x32xf32>
    %c2_i32_100 = arith.constant 2 : i32
    %341 = tpu.dynamic_rotate %334 by %c2_i32_100 dim 0 : vector<8x32xf32>, i32 -> vector<8x32xf32>
    %cst_101 = arith.constant 0.000000e+00 : f32
    %342 = vector.shape_cast %93 : vector<8x1xi1> to vector<8x1xi1>
    %343 = vector.broadcast %342 : vector<8x1xi1> to vector<8x32xi1>
    %344 = vector.broadcast %cst_101 : f32 to vector<8x32xf32>
    %345 = arith.select %343, %341, %344 : vector<8x32xi1>, vector<8x32xf32>
    %346 = arith.mulf %340, %345 : vector<8x32xf32>
    %347 = arith.addf %346, %334 : vector<8x32xf32>
    %c2_i32_102 = arith.constant 2 : i32
    %348 = tpu.dynamic_rotate %340 by %c2_i32_102 dim 0 : vector<8x32xf32>, i32 -> vector<8x32xf32>
    %cst_103 = arith.constant 1.000000e+00 : f32
    %349 = vector.shape_cast %93 : vector<8x1xi1> to vector<8x1xi1>
    %350 = vector.broadcast %349 : vector<8x1xi1> to vector<8x32xi1>
    %351 = vector.broadcast %cst_103 : f32 to vector<8x32xf32>
    %352 = arith.select %350, %348, %351 : vector<8x32xi1>, vector<8x32xf32>
    %353 = arith.mulf %340, %352 : vector<8x32xf32>
    %c4_i32_104 = arith.constant 4 : i32
    %354 = tpu.dynamic_rotate %347 by %c4_i32_104 dim 0 : vector<8x32xf32>, i32 -> vector<8x32xf32>
    %cst_105 = arith.constant 0.000000e+00 : f32
    %355 = vector.shape_cast %95 : vector<8x1xi1> to vector<8x1xi1>
    %356 = vector.broadcast %355 : vector<8x1xi1> to vector<8x32xi1>
    %357 = vector.broadcast %cst_105 : f32 to vector<8x32xf32>
    %358 = arith.select %356, %354, %357 : vector<8x32xi1>, vector<8x32xf32>
    %359 = arith.mulf %353, %358 : vector<8x32xf32>
    %360 = arith.addf %359, %347 : vector<8x32xf32>
    %c4_i32_106 = arith.constant 4 : i32
    %361 = tpu.dynamic_rotate %353 by %c4_i32_106 dim 0 : vector<8x32xf32>, i32 -> vector<8x32xf32>
    %cst_107 = arith.constant 1.000000e+00 : f32
    %362 = vector.shape_cast %95 : vector<8x1xi1> to vector<8x1xi1>
    %363 = vector.broadcast %362 : vector<8x1xi1> to vector<8x32xi1>
    %364 = vector.broadcast %cst_107 : f32 to vector<8x32xf32>
    %365 = arith.select %363, %361, %364 : vector<8x32xi1>, vector<8x32xf32>
    %366 = arith.mulf %353, %365 : vector<8x32xf32>
    %367 = vector.extract_strided_slice %88 {offsets = [4, 0], sizes = [1, 32], strides = [1, 1]} : vector<8x32xf32> to vector<1x32xf32>
    %368 = vector.broadcast %367 : vector<1x32xf32> to vector<8x32xf32>
    %369 = arith.mulf %366, %368 : vector<8x32xf32>
    %370 = arith.addf %369, %360 : vector<8x32xf32>
    %371 = vector.extract_strided_slice %370 {offsets = [7, 0], sizes = [1, 32], strides = [1, 1]} : vector<8x32xf32> to vector<1x32xf32>
    %c4 = arith.constant 4 : index
    %c0_108 = arith.constant 0 : index
    %372 = vector.load %arg18[%c4, %c0_108] : memref<8x32xf32, #tpu.memory_space<vmem>>, vector<1x32xf32>
    tpu.vector_store %arg18[%c4, %c0_108], %371 {strides = array<i32>} : memref<8x32xf32, #tpu.memory_space<vmem>>, vector<1x32xf32>,
    %373 = vector.extract_strided_slice %66 {offsets = [0, 4], sizes = [8, 1], strides = [1, 1]} : vector<8x8xf32> to vector<8x1xf32>
    %374 = vector.broadcast %373 : vector<8x1xf32> to vector<8x32xf32>
    %375 = arith.mulf %374, %370 : vector<8x32xf32>
    %376 = arith.addf %320, %375 : vector<8x32xf32>
    %377 = vector.extract_strided_slice %86 {offsets = [5, 0], sizes = [1, 32], strides = [1, 1]} : vector<8x32xf32> to vector<1x32xf32>
    %378 = vector.broadcast %377 : vector<1x32xf32> to vector<8x32xf32>
    %379 = arith.mulf %85, %378 : vector<8x32xf32>
    %380 = math.exp %379 : vector<8x32xf32>
    %381 = vector.extract_strided_slice %65 {offsets = [0, 5], sizes = [8, 1], strides = [1, 1]} : vector<8x8xf32> to vector<8x1xf32>
    %382 = vector.broadcast %381 : vector<8x1xf32> to vector<8x32xf32>
    %383 = arith.mulf %87, %382 : vector<8x32xf32>
    %c1_i32_109 = arith.constant 1 : i32
    %384 = tpu.dynamic_rotate %383 by %c1_i32_109 dim 0 : vector<8x32xf32>, i32 -> vector<8x32xf32>
    %cst_110 = arith.constant 0.000000e+00 : f32
    %385 = vector.shape_cast %91 : vector<8x1xi1> to vector<8x1xi1>
    %386 = vector.broadcast %385 : vector<8x1xi1> to vector<8x32xi1>
    %387 = vector.broadcast %cst_110 : f32 to vector<8x32xf32>
    %388 = arith.select %386, %384, %387 : vector<8x32xi1>, vector<8x32xf32>
    %389 = arith.mulf %380, %388 : vector<8x32xf32>
    %390 = arith.addf %389, %383 : vector<8x32xf32>
    %c1_i32_111 = arith.constant 1 : i32
    %391 = tpu.dynamic_rotate %380 by %c1_i32_111 dim 0 : vector<8x32xf32>, i32 -> vector<8x32xf32>
    %cst_112 = arith.constant 1.000000e+00 : f32
    %392 = vector.shape_cast %91 : vector<8x1xi1> to vector<8x1xi1>
    %393 = vector.broadcast %392 : vector<8x1xi1> to vector<8x32xi1>
    %394 = vector.broadcast %cst_112 : f32 to vector<8x32xf32>
    %395 = arith.select %393, %391, %394 : vector<8x32xi1>, vector<8x32xf32>
    %396 = arith.mulf %380, %395 : vector<8x32xf32>
    %c2_i32_113 = arith.constant 2 : i32
    %397 = tpu.dynamic_rotate %390 by %c2_i32_113 dim 0 : vector<8x32xf32>, i32 -> vector<8x32xf32>
    %cst_114 = arith.constant 0.000000e+00 : f32
    %398 = vector.shape_cast %93 : vector<8x1xi1> to vector<8x1xi1>
    %399 = vector.broadcast %398 : vector<8x1xi1> to vector<8x32xi1>
    %400 = vector.broadcast %cst_114 : f32 to vector<8x32xf32>
    %401 = arith.select %399, %397, %400 : vector<8x32xi1>, vector<8x32xf32>
    %402 = arith.mulf %396, %401 : vector<8x32xf32>
    %403 = arith.addf %402, %390 : vector<8x32xf32>
    %c2_i32_115 = arith.constant 2 : i32
    %404 = tpu.dynamic_rotate %396 by %c2_i32_115 dim 0 : vector<8x32xf32>, i32 -> vector<8x32xf32>
    %cst_116 = arith.constant 1.000000e+00 : f32
    %405 = vector.shape_cast %93 : vector<8x1xi1> to vector<8x1xi1>
    %406 = vector.broadcast %405 : vector<8x1xi1> to vector<8x32xi1>
    %407 = vector.broadcast %cst_116 : f32 to vector<8x32xf32>
    %408 = arith.select %406, %404, %407 : vector<8x32xi1>, vector<8x32xf32>
    %409 = arith.mulf %396, %408 : vector<8x32xf32>
    %c4_i32_117 = arith.constant 4 : i32
    %410 = tpu.dynamic_rotate %403 by %c4_i32_117 dim 0 : vector<8x32xf32>, i32 -> vector<8x32xf32>
    %cst_118 = arith.constant 0.000000e+00 : f32
    %411 = vector.shape_cast %95 : vector<8x1xi1> to vector<8x1xi1>
    %412 = vector.broadcast %411 : vector<8x1xi1> to vector<8x32xi1>
    %413 = vector.broadcast %cst_118 : f32 to vector<8x32xf32>
    %414 = arith.select %412, %410, %413 : vector<8x32xi1>, vector<8x32xf32>
    %415 = arith.mulf %409, %414 : vector<8x32xf32>
    %416 = arith.addf %415, %403 : vector<8x32xf32>
    %c4_i32_119 = arith.constant 4 : i32
    %417 = tpu.dynamic_rotate %409 by %c4_i32_119 dim 0 : vector<8x32xf32>, i32 -> vector<8x32xf32>
    %cst_120 = arith.constant 1.000000e+00 : f32
    %418 = vector.shape_cast %95 : vector<8x1xi1> to vector<8x1xi1>
    %419 = vector.broadcast %418 : vector<8x1xi1> to vector<8x32xi1>
    %420 = vector.broadcast %cst_120 : f32 to vector<8x32xf32>
    %421 = arith.select %419, %417, %420 : vector<8x32xi1>, vector<8x32xf32>
    %422 = arith.mulf %409, %421 : vector<8x32xf32>
    %423 = vector.extract_strided_slice %88 {offsets = [5, 0], sizes = [1, 32], strides = [1, 1]} : vector<8x32xf32> to vector<1x32xf32>
    %424 = vector.broadcast %423 : vector<1x32xf32> to vector<8x32xf32>
    %425 = arith.mulf %422, %424 : vector<8x32xf32>
    %426 = arith.addf %425, %416 : vector<8x32xf32>
    %427 = vector.extract_strided_slice %426 {offsets = [7, 0], sizes = [1, 32], strides = [1, 1]} : vector<8x32xf32> to vector<1x32xf32>
    %c5 = arith.constant 5 : index
    %c0_121 = arith.constant 0 : index
    %428 = vector.load %arg18[%c5, %c0_121] : memref<8x32xf32, #tpu.memory_space<vmem>>, vector<1x32xf32>
    tpu.vector_store %arg18[%c5, %c0_121], %427 {strides = array<i32>} : memref<8x32xf32, #tpu.memory_space<vmem>>, vector<1x32xf32>,
    %429 = vector.extract_strided_slice %66 {offsets = [0, 5], sizes = [8, 1], strides = [1, 1]} : vector<8x8xf32> to vector<8x1xf32>
    %430 = vector.broadcast %429 : vector<8x1xf32> to vector<8x32xf32>
    %431 = arith.mulf %430, %426 : vector<8x32xf32>
    %432 = arith.addf %376, %431 : vector<8x32xf32>
    %433 = vector.extract_strided_slice %86 {offsets = [6, 0], sizes = [1, 32], strides = [1, 1]} : vector<8x32xf32> to vector<1x32xf32>
    %434 = vector.broadcast %433 : vector<1x32xf32> to vector<8x32xf32>
    %435 = arith.mulf %85, %434 : vector<8x32xf32>
    %436 = math.exp %435 : vector<8x32xf32>
    %437 = vector.extract_strided_slice %65 {offsets = [0, 6], sizes = [8, 1], strides = [1, 1]} : vector<8x8xf32> to vector<8x1xf32>
    %438 = vector.broadcast %437 : vector<8x1xf32> to vector<8x32xf32>
    %439 = arith.mulf %87, %438 : vector<8x32xf32>
    %c1_i32_122 = arith.constant 1 : i32
    %440 = tpu.dynamic_rotate %439 by %c1_i32_122 dim 0 : vector<8x32xf32>, i32 -> vector<8x32xf32>
    %cst_123 = arith.constant 0.000000e+00 : f32
    %441 = vector.shape_cast %91 : vector<8x1xi1> to vector<8x1xi1>
    %442 = vector.broadcast %441 : vector<8x1xi1> to vector<8x32xi1>
    %443 = vector.broadcast %cst_123 : f32 to vector<8x32xf32>
    %444 = arith.select %442, %440, %443 : vector<8x32xi1>, vector<8x32xf32>
    %445 = arith.mulf %436, %444 : vector<8x32xf32>
    %446 = arith.addf %445, %439 : vector<8x32xf32>
    %c1_i32_124 = arith.constant 1 : i32
    %447 = tpu.dynamic_rotate %436 by %c1_i32_124 dim 0 : vector<8x32xf32>, i32 -> vector<8x32xf32>
    %cst_125 = arith.constant 1.000000e+00 : f32
    %448 = vector.shape_cast %91 : vector<8x1xi1> to vector<8x1xi1>
    %449 = vector.broadcast %448 : vector<8x1xi1> to vector<8x32xi1>
    %450 = vector.broadcast %cst_125 : f32 to vector<8x32xf32>
    %451 = arith.select %449, %447, %450 : vector<8x32xi1>, vector<8x32xf32>
    %452 = arith.mulf %436, %451 : vector<8x32xf32>
    %c2_i32_126 = arith.constant 2 : i32
    %453 = tpu.dynamic_rotate %446 by %c2_i32_126 dim 0 : vector<8x32xf32>, i32 -> vector<8x32xf32>
    %cst_127 = arith.constant 0.000000e+00 : f32
    %454 = vector.shape_cast %93 : vector<8x1xi1> to vector<8x1xi1>
    %455 = vector.broadcast %454 : vector<8x1xi1> to vector<8x32xi1>
    %456 = vector.broadcast %cst_127 : f32 to vector<8x32xf32>
    %457 = arith.select %455, %453, %456 : vector<8x32xi1>, vector<8x32xf32>
    %458 = arith.mulf %452, %457 : vector<8x32xf32>
    %459 = arith.addf %458, %446 : vector<8x32xf32>
    %c2_i32_128 = arith.constant 2 : i32
    %460 = tpu.dynamic_rotate %452 by %c2_i32_128 dim 0 : vector<8x32xf32>, i32 -> vector<8x32xf32>
    %cst_129 = arith.constant 1.000000e+00 : f32
    %461 = vector.shape_cast %93 : vector<8x1xi1> to vector<8x1xi1>
    %462 = vector.broadcast %461 : vector<8x1xi1> to vector<8x32xi1>
    %463 = vector.broadcast %cst_129 : f32 to vector<8x32xf32>
    %464 = arith.select %462, %460, %463 : vector<8x32xi1>, vector<8x32xf32>
    %465 = arith.mulf %452, %464 : vector<8x32xf32>
    %c4_i32_130 = arith.constant 4 : i32
    %466 = tpu.dynamic_rotate %459 by %c4_i32_130 dim 0 : vector<8x32xf32>, i32 -> vector<8x32xf32>
    %cst_131 = arith.constant 0.000000e+00 : f32
    %467 = vector.shape_cast %95 : vector<8x1xi1> to vector<8x1xi1>
    %468 = vector.broadcast %467 : vector<8x1xi1> to vector<8x32xi1>
    %469 = vector.broadcast %cst_131 : f32 to vector<8x32xf32>
    %470 = arith.select %468, %466, %469 : vector<8x32xi1>, vector<8x32xf32>
    %471 = arith.mulf %465, %470 : vector<8x32xf32>
    %472 = arith.addf %471, %459 : vector<8x32xf32>
    %c4_i32_132 = arith.constant 4 : i32
    %473 = tpu.dynamic_rotate %465 by %c4_i32_132 dim 0 : vector<8x32xf32>, i32 -> vector<8x32xf32>
    %cst_133 = arith.constant 1.000000e+00 : f32
    %474 = vector.shape_cast %95 : vector<8x1xi1> to vector<8x1xi1>
    %475 = vector.broadcast %474 : vector<8x1xi1> to vector<8x32xi1>
    %476 = vector.broadcast %cst_133 : f32 to vector<8x32xf32>
    %477 = arith.select %475, %473, %476 : vector<8x32xi1>, vector<8x32xf32>
    %478 = arith.mulf %465, %477 : vector<8x32xf32>
    %479 = vector.extract_strided_slice %88 {offsets = [6, 0], sizes = [1, 32], strides = [1, 1]} : vector<8x32xf32> to vector<1x32xf32>
    %480 = vector.broadcast %479 : vector<1x32xf32> to vector<8x32xf32>
    %481 = arith.mulf %478, %480 : vector<8x32xf32>
    %482 = arith.addf %481, %472 : vector<8x32xf32>
    %483 = vector.extract_strided_slice %482 {offsets = [7, 0], sizes = [1, 32], strides = [1, 1]} : vector<8x32xf32> to vector<1x32xf32>
    %c6 = arith.constant 6 : index
    %c0_134 = arith.constant 0 : index
    %484 = vector.load %arg18[%c6, %c0_134] : memref<8x32xf32, #tpu.memory_space<vmem>>, vector<1x32xf32>
    tpu.vector_store %arg18[%c6, %c0_134], %483 {strides = array<i32>} : memref<8x32xf32, #tpu.memory_space<vmem>>, vector<1x32xf32>,
    %485 = vector.extract_strided_slice %66 {offsets = [0, 6], sizes = [8, 1], strides = [1, 1]} : vector<8x8xf32> to vector<8x1xf32>
    %486 = vector.broadcast %485 : vector<8x1xf32> to vector<8x32xf32>
    %487 = arith.mulf %486, %482 : vector<8x32xf32>
    %488 = arith.addf %432, %487 : vector<8x32xf32>
    %489 = vector.extract_strided_slice %86 {offsets = [7, 0], sizes = [1, 32], strides = [1, 1]} : vector<8x32xf32> to vector<1x32xf32>
    %490 = vector.broadcast %489 : vector<1x32xf32> to vector<8x32xf32>
    %491 = arith.mulf %85, %490 : vector<8x32xf32>
    %492 = math.exp %491 : vector<8x32xf32>
    %493 = vector.extract_strided_slice %65 {offsets = [0, 7], sizes = [8, 1], strides = [1, 1]} : vector<8x8xf32> to vector<8x1xf32>
    %494 = vector.broadcast %493 : vector<8x1xf32> to vector<8x32xf32>
    %495 = arith.mulf %87, %494 : vector<8x32xf32>
    %c1_i32_135 = arith.constant 1 : i32
    %496 = tpu.dynamic_rotate %495 by %c1_i32_135 dim 0 : vector<8x32xf32>, i32 -> vector<8x32xf32>
    %cst_136 = arith.constant 0.000000e+00 : f32
    %497 = vector.shape_cast %91 : vector<8x1xi1> to vector<8x1xi1>
    %498 = vector.broadcast %497 : vector<8x1xi1> to vector<8x32xi1>
    %499 = vector.broadcast %cst_136 : f32 to vector<8x32xf32>
    %500 = arith.select %498, %496, %499 : vector<8x32xi1>, vector<8x32xf32>
    %501 = arith.mulf %492, %500 : vector<8x32xf32>
    %502 = arith.addf %501, %495 : vector<8x32xf32>
    %c1_i32_137 = arith.constant 1 : i32
    %503 = tpu.dynamic_rotate %492 by %c1_i32_137 dim 0 : vector<8x32xf32>, i32 -> vector<8x32xf32>
    %cst_138 = arith.constant 1.000000e+00 : f32
    %504 = vector.shape_cast %91 : vector<8x1xi1> to vector<8x1xi1>
    %505 = vector.broadcast %504 : vector<8x1xi1> to vector<8x32xi1>
    %506 = vector.broadcast %cst_138 : f32 to vector<8x32xf32>
    %507 = arith.select %505, %503, %506 : vector<8x32xi1>, vector<8x32xf32>
    %508 = arith.mulf %492, %507 : vector<8x32xf32>
    %c2_i32_139 = arith.constant 2 : i32
    %509 = tpu.dynamic_rotate %502 by %c2_i32_139 dim 0 : vector<8x32xf32>, i32 -> vector<8x32xf32>
    %cst_140 = arith.constant 0.000000e+00 : f32
    %510 = vector.shape_cast %93 : vector<8x1xi1> to vector<8x1xi1>
    %511 = vector.broadcast %510 : vector<8x1xi1> to vector<8x32xi1>
    %512 = vector.broadcast %cst_140 : f32 to vector<8x32xf32>
    %513 = arith.select %511, %509, %512 : vector<8x32xi1>, vector<8x32xf32>
    %514 = arith.mulf %508, %513 : vector<8x32xf32>
    %515 = arith.addf %514, %502 : vector<8x32xf32>
    %c2_i32_141 = arith.constant 2 : i32
    %516 = tpu.dynamic_rotate %508 by %c2_i32_141 dim 0 : vector<8x32xf32>, i32 -> vector<8x32xf32>
    %cst_142 = arith.constant 1.000000e+00 : f32
    %517 = vector.shape_cast %93 : vector<8x1xi1> to vector<8x1xi1>
    %518 = vector.broadcast %517 : vector<8x1xi1> to vector<8x32xi1>
    %519 = vector.broadcast %cst_142 : f32 to vector<8x32xf32>
    %520 = arith.select %518, %516, %519 : vector<8x32xi1>, vector<8x32xf32>
    %521 = arith.mulf %508, %520 : vector<8x32xf32>
    %c4_i32_143 = arith.constant 4 : i32
    %522 = tpu.dynamic_rotate %515 by %c4_i32_143 dim 0 : vector<8x32xf32>, i32 -> vector<8x32xf32>
    %cst_144 = arith.constant 0.000000e+00 : f32
    %523 = vector.shape_cast %95 : vector<8x1xi1> to vector<8x1xi1>
    %524 = vector.broadcast %523 : vector<8x1xi1> to vector<8x32xi1>
    %525 = vector.broadcast %cst_144 : f32 to vector<8x32xf32>
    %526 = arith.select %524, %522, %525 : vector<8x32xi1>, vector<8x32xf32>
    %527 = arith.mulf %521, %526 : vector<8x32xf32>
    %528 = arith.addf %527, %515 : vector<8x32xf32>
    %c4_i32_145 = arith.constant 4 : i32
    %529 = tpu.dynamic_rotate %521 by %c4_i32_145 dim 0 : vector<8x32xf32>, i32 -> vector<8x32xf32>
    %cst_146 = arith.constant 1.000000e+00 : f32
    %530 = vector.shape_cast %95 : vector<8x1xi1> to vector<8x1xi1>
    %531 = vector.broadcast %530 : vector<8x1xi1> to vector<8x32xi1>
    %532 = vector.broadcast %cst_146 : f32 to vector<8x32xf32>
    %533 = arith.select %531, %529, %532 : vector<8x32xi1>, vector<8x32xf32>
    %534 = arith.mulf %521, %533 : vector<8x32xf32>
    %535 = vector.extract_strided_slice %88 {offsets = [7, 0], sizes = [1, 32], strides = [1, 1]} : vector<8x32xf32> to vector<1x32xf32>
    %536 = vector.broadcast %535 : vector<1x32xf32> to vector<8x32xf32>
    %537 = arith.mulf %534, %536 : vector<8x32xf32>
    %538 = arith.addf %537, %528 : vector<8x32xf32>
    %539 = vector.extract_strided_slice %538 {offsets = [7, 0], sizes = [1, 32], strides = [1, 1]} : vector<8x32xf32> to vector<1x32xf32>
    %c7 = arith.constant 7 : index
    %c0_147 = arith.constant 0 : index
    %540 = vector.load %arg18[%c7, %c0_147] : memref<8x32xf32, #tpu.memory_space<vmem>>, vector<1x32xf32>
    tpu.vector_store %arg18[%c7, %c0_147], %539 {strides = array<i32>} : memref<8x32xf32, #tpu.memory_space<vmem>>, vector<1x32xf32>,
    %541 = vector.extract_strided_slice %66 {offsets = [0, 7], sizes = [8, 1], strides = [1, 1]} : vector<8x8xf32> to vector<8x1xf32>
    %542 = vector.broadcast %541 : vector<8x1xf32> to vector<8x32xf32>
    %543 = arith.mulf %542, %538 : vector<8x32xf32>
    %544 = arith.addf %488, %543 : vector<8x32xf32>
    %c0_148 = arith.constant 0 : index
    %c0_149 = arith.constant 0 : index
    %545 = vector.load %arg11[%c0_148, %c0_149] : memref<32x32xf32, #tpu.memory_space<vmem>>, vector<32x32xf32>
    %cst_150 = arith.constant dense<0.000000e+00> : vector<8x32xf32>
    %546 = tpu.matmul %544, %545, %cst_150 {dimension_numbers = #tpu.dot_dimension_numbers<[1], [0], [0], [1], [0, 0, 1, 1], [], []>} : vector<8x32xf32>, vector<32x32xf32>, vector<8x32xf32> -> vector<8x32xf32>
    %547 = arith.addf %546, %4 : vector<8x32xf32>
    %c0_151 = arith.constant 0 : index
    %c0_152 = arith.constant 0 : index
    %548 = vector.load %arg12[%c0_151, %c0_152] : memref<1x32xf32, #tpu.memory_space<vmem>>, vector<1x32xf32>
    %c0_153 = arith.constant 0 : index
    %c0_154 = arith.constant 0 : index
    %549 = vector.load %arg13[%c0_153, %c0_154] : memref<1x32xf32, #tpu.memory_space<vmem>>, vector<1x32xf32>
    %cst_155 = arith.constant dense<0.000000e+00> : vector<8xf32>
    %550 = vector.multi_reduction <add>, %547, %cst_155 [1] : vector<8x32xf32> to vector<8xf32>
    %551 = vector.shape_cast %550 : vector<8xf32> to vector<8x1xf32>
    %cst_156 = arith.constant 3.200000e+01 : f32
    %552 = vector.broadcast %cst_156 : f32 to vector<8x1xf32>
    %553 = arith.divf %551, %552 : vector<8x1xf32>
    %554 = vector.broadcast %553 : vector<8x1xf32> to vector<8x32xf32>
    %555 = arith.subf %547, %554 : vector<8x32xf32>
    %556 = arith.mulf %555, %555 : vector<8x32xf32>
    %cst_157 = arith.constant dense<0.000000e+00> : vector<8xf32>
    %557 = vector.multi_reduction <add>, %556, %cst_157 [1] : vector<8x32xf32> to vector<8xf32>
    %558 = vector.shape_cast %557 : vector<8xf32> to vector<8x1xf32>
    %cst_158 = arith.constant 3.200000e+01 : f32
    %559 = vector.broadcast %cst_158 : f32 to vector<8x1xf32>
    %560 = arith.divf %558, %559 : vector<8x1xf32>
    %561 = vector.broadcast %553 : vector<8x1xf32> to vector<8x32xf32>
    %562 = arith.subf %547, %561 : vector<8x32xf32>
    %cst_159 = arith.constant 9.99999974E-6 : f32
    %563 = vector.broadcast %cst_159 : f32 to vector<8x1xf32>
    %564 = arith.addf %560, %563 : vector<8x1xf32>
    %565 = math.rsqrt %564 : vector<8x1xf32>
    %566 = vector.broadcast %565 : vector<8x1xf32> to vector<8x32xf32>
    %567 = arith.mulf %562, %566 : vector<8x32xf32>
    %568 = vector.broadcast %548 : vector<1x32xf32> to vector<8x32xf32>
    %569 = arith.mulf %567, %568 : vector<8x32xf32>
    %570 = vector.broadcast %549 : vector<1x32xf32> to vector<8x32xf32>
    %571 = arith.addf %569, %570 : vector<8x32xf32>
    %c0_160 = arith.constant 0 : index
    %c0_161 = arith.constant 0 : index
    %572 = vector.load %arg14[%c0_160, %c0_161] : memref<32x128xf32, #tpu.memory_space<vmem>>, vector<32x128xf32>
    %cst_162 = arith.constant dense<0.000000e+00> : vector<8x128xf32>
    %573 = tpu.matmul %571, %572, %cst_162 {dimension_numbers = #tpu.dot_dimension_numbers<[1], [0], [0], [1], [0, 0, 1, 1], [], []>} : vector<8x32xf32>, vector<32x128xf32>, vector<8x128xf32> -> vector<8x128xf32>
    %574 = vector.extract_strided_slice %573 {offsets = [0, 0], sizes = [8, 64], strides = [1, 1]} : vector<8x128xf32> to vector<8x64xf32>
    %575 = arith.negf %574 : vector<8x64xf32>
    %576 = math.exp %575 : vector<8x64xf32>
    %cst_163 = arith.constant 1.000000e+00 : f32
    %577 = vector.broadcast %cst_163 : f32 to vector<8x64xf32>
    %578 = arith.addf %577, %576 : vector<8x64xf32>
    %579 = arith.divf %577, %578 : vector<8x64xf32>
    %580 = arith.mulf %574, %579 : vector<8x64xf32>
    %581 = vector.extract_strided_slice %573 {offsets = [0, 64], sizes = [8, 64], strides = [1, 1]} : vector<8x128xf32> to vector<8x64xf32>
    %c0_164 = arith.constant 0 : index
    %c0_165 = arith.constant 0 : index
    %582 = vector.load %arg15[%c0_164, %c0_165] : memref<64x32xf32, #tpu.memory_space<vmem>>, vector<64x32xf32>
    %583 = arith.mulf %580, %581 : vector<8x64xf32>
    %cst_166 = arith.constant dense<0.000000e+00> : vector<8x32xf32>
    %584 = tpu.matmul %583, %582, %cst_166 {dimension_numbers = #tpu.dot_dimension_numbers<[1], [0], [0], [1], [0, 0, 1, 1], [], []>} : vector<8x64xf32>, vector<64x32xf32>, vector<8x32xf32> -> vector<8x32xf32>
    %585 = arith.addf %584, %547 : vector<8x32xf32>
    %c0_167 = arith.constant 0 : index
    %c0_168 = arith.constant 0 : index
    %c0_169 = arith.constant 0 : index
    %586 = vector.load %arg16[%c0_167, %c0_168, %c0_169] : memref<1x8x32xf32, #tpu.memory_space<vmem>>, vector<1x8x32xf32>
    %587 = vector.shape_cast %586 : vector<1x8x32xf32> to vector<8x32xf32>
    %588 = vector.shape_cast %585 : vector<8x32xf32> to vector<1x8x32xf32>
    tpu.vector_store %arg16[%c0_167, %c0_168, %c0_169], %588 {strides = array<i32>} : memref<1x8x32xf32, #tpu.memory_space<vmem>>, vector<1x8x32xf32>,
    return
  }
  func.func @transform_0(%arg0: i32, %arg1: i32) -> (i32, i32, i32) {
    %c0_i32 = arith.constant 0 : i32
    %c0_i32_0 = arith.constant 0 : i32
    return %arg0, %arg1, %c0_i32 : i32, i32, i32
  }
  func.func @transform_1(%arg0: i32, %arg1: i32) -> (i32, i32) {
    %c0_i32 = arith.constant 0 : i32
    %c0_i32_0 = arith.constant 0 : i32
    %c0_i32_1 = arith.constant 0 : i32
    return %c0_i32, %c0_i32_0 : i32, i32
  }
  func.func @transform_2(%arg0: i32, %arg1: i32) -> (i32, i32) {
    %c0_i32 = arith.constant 0 : i32
    %c0_i32_0 = arith.constant 0 : i32
    %c0_i32_1 = arith.constant 0 : i32
    return %c0_i32, %c0_i32_0 : i32, i32
  }
  func.func @transform_3(%arg0: i32, %arg1: i32) -> (i32, i32) {
    %c0_i32 = arith.constant 0 : i32
    %c0_i32_0 = arith.constant 0 : i32
    %c0_i32_1 = arith.constant 0 : i32
    return %c0_i32, %c0_i32_0 : i32, i32
  }
  func.func @transform_4(%arg0: i32, %arg1: i32) -> (i32, i32) {
    %c0_i32 = arith.constant 0 : i32
    %c0_i32_0 = arith.constant 0 : i32
    %c0_i32_1 = arith.constant 0 : i32
    return %c0_i32, %c0_i32_0 : i32, i32
  }
  func.func @transform_5(%arg0: i32, %arg1: i32) -> (i32, i32) {
    %c0_i32 = arith.constant 0 : i32
    %c0_i32_0 = arith.constant 0 : i32
    %c0_i32_1 = arith.constant 0 : i32
    return %c0_i32, %c0_i32_0 : i32, i32
  }
  func.func @transform_6(%arg0: i32, %arg1: i32) -> (i32, i32) {
    %c0_i32 = arith.constant 0 : i32
    %c0_i32_0 = arith.constant 0 : i32
    %c0_i32_1 = arith.constant 0 : i32
    return %c0_i32, %c0_i32_0 : i32, i32
  }
  func.func @transform_7(%arg0: i32, %arg1: i32) -> (i32, i32) {
    %c0_i32 = arith.constant 0 : i32
    %c0_i32_0 = arith.constant 0 : i32
    %c0_i32_1 = arith.constant 0 : i32
    return %c0_i32, %c0_i32_0 : i32, i32
  }
  func.func @transform_8(%arg0: i32, %arg1: i32) -> (i32, i32) {
    %c0_i32 = arith.constant 0 : i32
    %c0_i32_0 = arith.constant 0 : i32
    %c0_i32_1 = arith.constant 0 : i32
    return %c0_i32, %c0_i32_0 : i32, i32
  }
  func.func @transform_9(%arg0: i32, %arg1: i32) -> (i32, i32) {
    %c0_i32 = arith.constant 0 : i32
    %c0_i32_0 = arith.constant 0 : i32
    %c0_i32_1 = arith.constant 0 : i32
    return %c0_i32, %c0_i32_0 : i32, i32
  }
  func.func @transform_10(%arg0: i32, %arg1: i32) -> (i32, i32) {
    %c0_i32 = arith.constant 0 : i32
    %c0_i32_0 = arith.constant 0 : i32
    %c0_i32_1 = arith.constant 0 : i32
    return %c0_i32, %c0_i32_0 : i32, i32
  }
  func.func @transform_11(%arg0: i32, %arg1: i32) -> (i32, i32) {
    %c0_i32 = arith.constant 0 : i32
    %c0_i32_0 = arith.constant 0 : i32
    %c0_i32_1 = arith.constant 0 : i32
    return %c0_i32, %c0_i32_0 : i32, i32
  }
  func.func @transform_12(%arg0: i32, %arg1: i32) -> (i32, i32) {
    %c0_i32 = arith.constant 0 : i32
    %c0_i32_0 = arith.constant 0 : i32
    %c0_i32_1 = arith.constant 0 : i32
    return %c0_i32, %c0_i32_0 : i32, i32
  }
  func.func @transform_13(%arg0: i32, %arg1: i32) -> (i32, i32) {
    %c0_i32 = arith.constant 0 : i32
    %c0_i32_0 = arith.constant 0 : i32
    %c0_i32_1 = arith.constant 0 : i32
    return %c0_i32, %c0_i32_0 : i32, i32
  }
  func.func @transform_14(%arg0: i32, %arg1: i32) -> (i32, i32, i32) {
    %c0_i32 = arith.constant 0 : i32
    %c0_i32_0 = arith.constant 0 : i32
    return %arg0, %arg1, %c0_i32 : i32, i32, i32
  }
}

</mosaic_0001>

<bundles_post_ra>
// kernel: tpu_custom_call.1
= control target key start
LH: loop header
LB: loop body
LE: loop exit
PB: predicated region body
PF: predicated region fallthrough
CT: control target
= control target key end

     0   :  { %s1984_s0 = inlined_call_operand.vmem [shape: f32[2,8,32], index: 0, kind: input, shape index: {}]   ;;  %s1985_s1 = inlined_call_operand.vmem [shape: f32[1,32], index: 1, kind: input, shape index: {}]   ;;  %s1986_s2 = inlined_call_operand.vmem [shape: f32[1,32], index: 2, kind: input, shape index: {}]   ;;  %s1987_s3 = inlined_call_operand.vmem [shape: f32[4,32], index: 3, kind: input, shape index: {}]   ;;  %s1988_s4 = inlined_call_operand.vmem [shape: f32[1,32], index: 4, kind: input, shape index: {}]   ;;  %s1989_s5 = inlined_call_operand.vmem [shape: f32[32,24], index: 5, kind: input, shape index: {}]   ;;  %s1990_s6 = inlined_call_operand.vmem [shape: f32[8,32], index: 6, kind: input, shape index: {}]   ;;  %s1991_s7 = inlined_call_operand.vmem [shape: f32[1,32], index: 7, kind: input, shape index: {}]   ;;  %s1992_s8 = inlined_call_operand.vmem [shape: f32[8,32], index: 8, kind: input, shape index: {}]   ;;  %s1993_s9 = inlined_call_operand.vmem [shape: f32[32,32], index: 9, kind: input, shape index: {}]   ;;  %s1994_s10 = inlined_call_operand.vmem [shape: f32[1,32], index: 10, kind: input, shape index: {}]   ;;  %s1995_s11 = inlined_call_operand.vmem [shape: f32[1,32], index: 11, kind: input, shape index: {}]   ;;  %s1996_s12 = inlined_call_operand.vmem [shape: f32[32,128], index: 12, kind: input, shape index: {}]   ;;  %s1997_s13 = inlined_call_operand.vmem [shape: f32[64,32], index: 13, kind: input, shape index: {}]   ;;  %s1998_s14 = inlined_call_operand.hbm [shape: f32[2,8,32], index: 14, kind: output, shape index: {}]  }
   0x1   :  { %2000 = sst [smem:[#allocation8_spill]] %s1984_s0 }
   0x2   :  { %2001 = sst [smem:[#allocation9_spill]] %s1985_s1 }
   0x3   :  { %2002 = sst [smem:[#allocation10_spill]] %s1986_s2 }
   0x4   :  { %2003 = sst [smem:[#allocation11_spill]] %s1987_s3 }
   0x5   :  { %2004 = sst [smem:[#allocation12_spill]] %s1988_s4 }
   0x6   :  { %19 = vsyncpa [#allocation5], 0 }
   0x7   :  { %21 = vsyncpa [#allocation5 + $0x1], 0  ;;  %s1544_s29 = smov 0   ;;  %s1546_s30 = smov 0  }
   0x8   :  { %s1548_s15 = smov 0   ;;  %s1550_s16 = smov 0  }
   0x9   :  { %s1552_s17 = smov 0   ;;  %s1554_s18 = smov 0  }
   0xa LB: > { %s1222_s19 = sadd.s32 4294967295, %s1448_s18   ;;  %s1223_s20 = sadd.s32 4294967294, %s1448_s18   ;;  %s1448_s18 = sphi %s1554_s18, %s27_s18   ;;  %s1444_s17 = sphi %s1552_s17, %s2018_s17   ;;  %s1440_s16 = sphi %s1550_s16, %s2017_s16   ;;  %s1436_s15 = sphi %s1548_s15, %s2016_s15   ;;  %s1432_s30 = sphi %s1546_s30, %s2015_s30   ;;  %s1428_s29 = sphi %s1544_s29, %s2014_s29  }
   0xb   : > { %s39_s21 = sadd.s32 1, %s1444_s17  ;;  %s349_s22 = sadd.s32 1, %s1436_s15 }
   0xc   : > { %p41_p0 = scmp.ge.s32.totalorder %s39_s21, 2  ;;  %p359_p1 = scmp.ne.s32.totalorder %s1436_s15, %s1432_s30 }
   0xd   : > { %p360_p2 = scmp.eq.s32.totalorder %s1222_s19, 1  ;;  %p365_p3 = scmp.ne.s32.totalorder %s1432_s30, %s1428_s29 }
   0xe   : > { %s2020_s21 = smov (%p41_p0, %s39_s21), 0  ;;  %p366_p5 = scmp.eq.s32.totalorder %s1223_s20, 1 }
   0xf   : > { %2005 = sst [smem:[#allocation7_spill]] %s2020_s21  ;;  %p1584_p4 = por %p360_p2, %p359_p1 }
  0x10   : > { %s344_s24 = ssub.s32 %s1444_s17, %s2020_s21  ;;  %p1226_p6 = scmp.ge.s32.totalorder %s1448_s18, 1 }
  0x11   : > { %p347_p7 = scmp.eq.s32.totalorder %s344_s24, 0  ;;  %p1591_p8 = por %p366_p5, %p365_p3 }
  0x12   : > { %p433_p9 = scmp.lt.s32.totalorder %s1448_s18, 3 }
  0x13   : > { %s1597_s26 = scalar_select %p347_p7, %s1436_s15, %s349_s22  }
  0x14   : > { %p434_p10 = pnand %p1226_p6, %p433_p9 }
  0x15   : > { %p481_p11 = scmp.lt.s32.totalorder (!%p434_p10), %s1440_s16, 1  ;;  %s2008_s0 = sld [smem:[#allocation8_spill]] (!%p434_p10) }
  0x16   : > { %437 = sbr.rel (%p434_p10) target bundleno = 1497 (0x5d9), region = 76  ;;  %s2009_s1 = sld [smem:[#allocation9_spill]] (!%p434_p10) }
  0x17   : > { %s2010_s2 = sld [smem:[#allocation10_spill]] (!%p434_p10)  ;;  %s1237_s20 = sshll.u32 (!%p434_p10), %s1440_s16, 3 }
  0x18   : > { %s2011_s3 = sld [smem:[#allocation11_spill]] (!%p434_p10)  ;;  %s1146_s24 = scalar_lea.hbm (!%p434_p10), %s1998_s14, %s1237_s20 }
  0x19   : > { %s2012_s4 = sld [smem:[#allocation12_spill]] (!%p434_p10) }
  0x1b   : > { %s482_s27 = scalar_select %p481_p11, %s1440_s16, 1  ;;  %vm492_vm0 = vcmask 261120   ;;  %v1450_v2 = vmov 32.0   ;;  %vm494_vm2 = vcmask 256000   ;;  %v584_v14 = vld [vmem:[%s1989_s5 + $0x18] sm:$0xff]  ;;  %v583_v15 = vld [vmem:[%s1989_s5 + $0x10] sm:$0xff] }
  0x1c   : > { %1336 = vrcp.f32 %v1450_v2  ;;  %v1451_v16 = vmov 0.0   ;;  %600 = vmatpush.msra.mxu0 %v584_v14  ;;  %v582_v17 = vld [vmem:[%s1989_s5 + $0x8] sm:$0xff]  ;;  %v581_v20 = vld [vmem:[%s1989_s5] sm:$0xff]  ;;  %vm559_vm6 = vcmask 261125   ;;  %v1452_v52 = vmov 12  }
  0x1d   : > { %s1228_s28 = sshll.u32 %s482_s27, 3  ;;  %495 = vst.msk [vmem:[#allocation2] sm:$0x7] %vm494_vm2, %v1451_v16  ;;  %v1330_v28 = vld [vmem:[%s2009_s1] ss:$0 sm:$0xff]  ;;  %1318 = vset.pattern.permute.xlu0 %v1452_v52  ;;  %v1453_v53 = vmov 10  }
  0x1e   : > { %s487_s21 = scalar_lea.vmem %s2008_s0, %s1228_s28  ;;  %493 = vst.msk [vmem:[#allocation3] sm:$0xff] %vm492_vm0, %v1451_v16  ;;  %601 = vmatpush.msra.mxu0 %v583_v15  ;;  %v1331_v30 = vld [vmem:[%s2010_s2] ss:$0 sm:$0xff]  ;;  %1316 = vset.pattern.permute.xlu2 %v1453_v53  ;;  %v1454_v55 = vmov 8   ;;  %vm613_vm11 = vcmask 64512   ;;  %v1460_v14 = vmov 16  }
  0x1f   : > { %v1604_v0 = vld [vmem:[%s487_s21] sm:$0xff]  ;;  %1314 = vset.pattern.permute.xlu1 %v1454_v55  ;;  %v1461_v15 = vmov 15   ;;  %v1462_v16 = vmov 18   ;;  %vm702_vm2 = vcmask 261127   ;;  %s1468_s0 = smov 64   ;;  %s478_s28 = sand.u32 1, %s1432_s30  }
  0x20   : > { %v500_v1 = vsel %vm492_vm0, %v1604_v0, 0.0  ;;  %602 = vmatpush.msra.mxu0 %v582_v17  ;;  %v538_v34 = vld [vmem:[%s2011_s3] sm:$0xf]  ;;  %v1463_v17 = vmov 17   ;;  %s1227_s19 = sshll.u32 %s478_s28, 3  ;;  %s1135_s2 = scalar_lea.sflag [#allocation5], %s478_s28 }
  0x21   : > { %501 = vadd.xlane.f32.xlu0 %v500_v1  ;;  %v544_v35 = vperm.slane %v538_v34, 0  ;;  %v1332_v36 = vld [vmem:[%s2012_s4] ss:$0 sm:$0xff]  ;;  %v548_v37 = vperm.slane %v538_v34, 1  ;;  %v552_v42 = vperm.slane %v538_v34, 2  ;;  %v556_v45 = vperm.slane %v538_v34, 3 }
  0x22   : > { %v1337_v3 = vpop.eup %1336  ;;  %603 = vmatpush.msra.mxu0 %v581_v20  ;;  %v1466_v20 = vmov 22   ;;  %s480_s27 = scalar_lea.vmem [#allocation4], %s1227_s19  ;;  %s1390_s19 = scalar_lea.hbm %s1998_s14, 16 }
  0x23   : > { %v504_v4 = vmul.f32 32.0, %v1337_v3  ;;  %vm508_vm1 = vweird.f32 %v1337_v3  ;;  %s1148_s1 = sshll.u32 %s480_s27, 4  ;;  %s1149_s1 = int_to_ptr.vmem [resolvable:$true] %s1148_s1 }
  0x25   : > { %v505_v5 = vsub.f32 1.0, %v504_v4 }
  0x27   : > { %v506_v6 = vmul.f32 %v1337_v3, %v505_v5 }
  0x29   : > { %v507_v7 = vadd.f32 %v1337_v3, %v506_v6  ;;  %v608_v6 = vld [vmem:[%s1990_s6] sm:$0xff] }
  0x2a   : > { %632 = vmatpush.msra.mxu2 %v608_v6 }
  0x2b   : > { %v1608_v8 = vsel %vm508_vm1, %v1337_v3, %v507_v7 }
  0x94   : > { %v502_v9 = vpop.xlane.xlu0 %501 }
  0x95   : > { %v510_v10 = vmul.f32 %v1608_v8, %v502_v9  ;;  %v1455_v9 = vmov 23  }
  0x97   : > { %v511_v11 = vsub.f32 %v1604_v0, %v510_v10  ;;  %v1456_v10 = vmov 11  }
  0x99   : > { %v512_v12 = vmul.f32 %v511_v11, %v511_v11 }
  0x9b   : > { %v513_v13 = vsel %vm492_vm0, %v512_v12, 0.0  ;;  %v1458_v12 = vmov 14  }
  0x9c   : > { %514 = vadd.xlane.f32.xlu0 %v513_v13  ;;  %v1459_v13 = vmov 13  }
 0x10f   : > { %v515_v18 = vpop.xlane.xlu0 %514 }
 0x110   : > { %v516_v19 = vmul.f32 %v515_v18, %v1608_v8  ;;  %v1464_v18 = vmov 20  }
 0x112   : > { %v517_v21 = vadd.f32 1e-05, %v516_v19  ;;  %v1465_v19 = vmov 19  }
 0x114   : > { %1338 = vrsqrt.f32 %v517_v21  ;;  %vm524_vm4 = vweird.f32 %v517_v21 }
 0x11a   : > { %v1339_v22 = vpop.eup %1338 }
 0x11b   : > { %v519_v23 = vmul.f32 %v1339_v22, %v517_v21  ;;  %vm525_vm3 = vweird.f32 %v1339_v22  ;;  %v1467_v21 = vmov 21  }
 0x11c   : > { %vm526_vm5 = vmor %vm524_vm4, %vm525_vm3 }
 0x11d   : > { %v520_v24 = vmul.f32 %v1339_v22, %v519_v23 }
 0x11f   : > { %v521_v25 = vmul.f32 0.5, %v520_v24 }
 0x121   : > { %v522_v26 = vsub.f32 1.5, %v521_v25 }
 0x123   : > { %v523_v27 = vmul.f32 %v1339_v22, %v522_v26 }
 0x125   : > { %v527_v29 = vsel %vm526_vm5, %v1339_v22, %v523_v27  ;;  %v1333_v22 = vld [vmem:[%s1991_s7] ss:$0 sm:$0xff] }
 0x126   : > { %v528_v31 = vmul.f32 %v527_v29, %v511_v11  ;;  %v1457_v11 = vmov 9  }
 0x128   : > { %v532_v32 = vmul.f32 %v1330_v28, %v528_v31 }
 0x12a   : > { %v536_v33 = vadd.f32 %v1331_v30, %v532_v32 }
 0x12c   : > { %537 = vst.msk [vmem:[#allocation2 + $0x3] sm:$0xff] %vm492_vm0, %v536_v33 }
 0x133   : > { %v543_v38 = vld [vmem:[#allocation2] sm:$0xff] }
 0x134   : > { %v547_v39 = vld [vmem:[#allocation2 + $0x1] sm:$0xff]  ;;  %v545_v41 = vmul.f32 %v544_v35, %v543_v38 }
 0x135   : > { %v551_v40 = vld [vmem:[#allocation2 + $0x2] sm:$0xff]  ;;  %v549_v44 = vmul.f32 %v548_v37, %v547_v39 }
 0x136   : > { %560 = vst.msk [vmem:[#allocation2 - $0x5] sm:$0xe0] %vm559_vm6, %v536_v33  ;;  %v546_v43 = vadd.f32 %v1332_v36, %v545_v41  ;;  %v555_v46 = vld [vmem:[#allocation2 + $0x3] sm:$0xff]  ;;  %v553_v48 = vmul.f32 %v552_v42, %v551_v40 }
 0x137   : > { %v557_v50 = vmul.f32 %v556_v45, %v555_v46  ;;  %v1661_v39 = vld [vmem:[%s1992_s8] sm:$0xff] }
 0x138   : > { %v550_v47 = vadd.f32 %v549_v44, %v546_v43  ;;  %v658_v43 = vlaneseq  ;;  %v663_v45 = vperm.slane %v1661_v39, 0  ;;  %v750_v46 = vperm.slane %v1661_v39, 2 }
 0x13a   : > { %v554_v49 = vadd.f32 %v553_v48, %v550_v47  ;;  %v870_v47 = vperm.slane %v1661_v39, 5  ;;  %v1669_v53 = vshrl.u32 %v658_v43, 7 }
 0x13c   : > { %v558_v51 = vadd.f32 %v557_v50, %v554_v49  ;;  %v830_v49 = vperm.slane %v1661_v39, 4  ;;  %v950_v50 = vperm.slane %v1661_v39, 7  ;;  %vm660_vm14 = vcmp.ge.s32.totalorder %v1669_v53, 1 }
 0x13d   : > { %vm661_vm15 = vcmp.ge.s32.totalorder %v1669_v53, 2  ;;  %vm662_vm1 = vcmp.ge.s32.totalorder %v1669_v53, 4 }
 0x13e   : > { %v1229_v54 = vmul.f32 -1.442695, %v558_v51 }
 0x140   : > { %1340 = vpow2.f32 %v1229_v54 }
 0x146   : > { %v1341_v56 = vpop.eup %1340 }
 0x147   : > { %v564_v57 = vadd.f32 1.0, %v1341_v56 }
 0x149   : > { %1342 = vrcp.f32 %v564_v57  ;;  %v576_v61 = vand.u32 2147483648, %v564_v57  ;;  %v574_v63 = vand.u32 2147483647, %v564_v57  ;;  %vm570_vm8 = vweird.f32 %v564_v57 }
 0x14b   : > { %v577_v2 = vor.u32 1.1754944e-38, %v576_v61  ;;  %vm575_vm10 = vcmp.eq.f32.partialorder %v574_v63, 8.507059e+37 }
 0x14f   : > { %v1343_v58 = vpop.eup %1342 }
 0x150   : > { %v566_v59 = vmul.f32 %v1343_v58, %v564_v57  ;;  %vm571_vm7 = vweird.f32 %v1343_v58 }
 0x151   : > { %vm572_vm9 = vmor %vm570_vm8, %vm571_vm7 }
 0x152   : > { %v567_v60 = vsub.f32 1.0, %v566_v59 }
 0x154   : > { %v568_v62 = vmul.f32 %v1343_v58, %v567_v60 }
 0x156   : > { %v569_v1 = vadd.f32 %v1343_v58, %v568_v62 }
 0x158   : > { %v573_v3 = vsel %vm572_vm9, %v1343_v58, %v569_v1  ;;  %v1672_v58 = vld [vmem:[#allocation3] sm:$0xff] }
 0x159   : > { %v578_v4 = vsel %vm575_vm10, %v577_v2, %v573_v3  ;;  %vm1109_vm10 = vcmask 523264  }
 0x15a   : > { %v1640_v5 = vmul.f32 %v578_v4, %v558_v51  ;;  %v910_v51 = vperm.slane %v1661_v39, 6 }
 0x15c   : > { %1230 = vmatmul.msk.f32.vlgmr.msra.gmra.mxu0 %vm492_vm0, %v1640_v5 }
 0x1d9   : > { %v605_v7 = vpop.f32.mrf.mxu0 }
 0x1da   : > { %835 = vperm.xlu0 %1318, %v605_v7   ;;  %755 = vperm.xlu2 %1316, %v605_v7  }
 0x1db   : > { %668 = vperm.xlu1 %1314, %v605_v7   ;;  %1231 = vmatmul.msk.f32.vlgmr.msra.gmra.mxu2 %vm613_vm11, %v605_v7 }
 0x1e2   : > { %1329 = vset.pattern.permute.xlu0 %v1455_v9  ;;  %1317 = vset.pattern.permute.xlu2 %v1456_v10 }
 0x1e3   : > { %1315 = vset.pattern.permute.xlu1 %v1457_v11  ;;  %985 = vperm.xlu0 %1329, %v605_v7  }
 0x1e4   : > { %795 = vperm.xlu2 %1317, %v605_v7   ;;  %715 = vperm.xlu1 %1315, %v605_v7  }
 0x1ec   : > { %1320 = vset.pattern.permute.xlu2 %v1458_v12  ;;  %1319 = vset.pattern.permute.xlu1 %v1459_v13  ;;  %v860_v13 = vperm.slane %v1672_v58, 4 }
 0x1ed   : > { %915 = vperm.xlu2 %1320, %v605_v7   ;;  %875 = vperm.xlu1 %1319, %v605_v7  }
 0x1f5   : > { %1322 = vset.pattern.permute.xlu2 %v1460_v14  ;;  %1321 = vset.pattern.permute.xlu1 %v1461_v15  ;;  %v790_v15 = vperm.slane %v1661_v39, 3 }
 0x1f6   : > { %705 = vperm.xlu2 %1322, %v605_v7   ;;  %955 = vperm.xlu1 %1321, %v605_v7  }
 0x1fe   : > { %1324 = vset.pattern.permute.xlu2 %v1462_v16  ;;  %1323 = vset.pattern.permute.xlu1 %v1463_v17  ;;  %v980_v17 = vperm.slane %v1672_v58, 7 }
 0x1ff   : > { %785 = vperm.xlu2 %1324, %v605_v7   ;;  %745 = vperm.xlu1 %1323, %v605_v7  }
 0x207   : > { %1326 = vset.pattern.permute.xlu2 %v1464_v18  ;;  %1325 = vset.pattern.permute.xlu1 %v1465_v19 }
 0x208   : > { %865 = vperm.xlu2 %1326, %v605_v7   ;;  %825 = vperm.xlu1 %1325, %v605_v7  }
 0x210   : > { %1328 = vset.pattern.permute.xlu2 %v1466_v20  ;;  %1327 = vset.pattern.permute.xlu1 %v1467_v21 }
 0x211   : > { %945 = vperm.xlu2 %1328, %v605_v7   ;;  %905 = vperm.xlu1 %1327, %v605_v7  }
 0x234   : > { %v1654_v30 = vpop.permute.xlu2 %755 }
 0x23e   : > { %v1656_v38 = vpop.permute.xlu2 %795 }
 0x247   : > { %v916_v6 = vpop.permute.xlu2 %915 }
 0x24c   : > { %v836_v62 = vpop.permute.xlu0 %835 }
 0x24d   : > { %v1650_v25 = vpop.permute.xlu1 %668 }
 0x256   : > { %v1652_v29 = vpop.permute.xlu1 %715 }
 0x25e   : > { %v634_v23 = vpop.f32.mrf.mxu2 }
 0x25f   : > { %v635_v24 = vadd.f32 %v1333_v22, %v634_v23  ;;  %v876_v36 = vpop.permute.xlu1 %875 }
 0x261   : > { %v640_v26 = vand.u32 2147483647, %v635_v24  ;;  %v637_v42 = vmax.f32 %v635_v24, 0.0  ;;  %vm638_vm13 = vcmp.ne.f32.partialorder %v635_v24, %v635_v24 }
 0x263   : > { %v641_v27 = vsub.f32 0.0, %v640_v26  ;;  %v940_v26 = vperm.slane %v1672_v58, 6 }
 0x265   : > { %v642_v28 = vmul.f32 1.442695, %v641_v27 }
 0x267   : > { %1344 = vpow2.f32 %v642_v28 }
 0x268   : > { %v956_v4 = vpop.permute.xlu1 %955 }
 0x26d   : > { %v1345_v31 = vpop.eup %1344 }
 0x26e   : > { %v644_v32 = vadd.f32 1.0, %v1345_v31  ;;  %v647_v33 = vmul.f32 -0.5, %v1345_v31  ;;  %v650_v35 = vand.u32 2147483647, %v1345_v31 }
 0x270   : > { %1346 = vlog2.f32 %v644_v32  ;;  %v648_v34 = vadd.f32 1.0, %v647_v33  ;;  %vm651_vm12 = vcmp.lt.f32.partialorder %v650_v35, 0.0004427343  ;;  %v699_v32 = vperm.slane %v1672_v58, 0 }
 0x272   : > { %v649_v41 = vmul.f32 %v1345_v31, %v648_v34 }
 0x276   : > { %v1347_v37 = vpop.eup %1346 }
 0x277   : > { %v646_v40 = vmul.f32 0.6931472, %v1347_v37 }
 0x279   : > { %v652_v44 = vsel %vm651_vm12, %v649_v41, %v646_v40 }
 0x27a   : > { %v653_v48 = vadd.f32 %v652_v44, %v637_v42 }
 0x27c   : > { %v654_v52 = vsel %vm638_vm13, %v635_v24, %v653_v48 }
 0x27d   : > { %v656_v54 = vmul.f32 %v654_v52, %v1640_v5  ;;  %v664_v55 = vmul.f32 %v663_v45, %v654_v52  ;;  %v751_v56 = vmul.f32 %v750_v46, %v654_v52  ;;  %v871_v57 = vmul.f32 %v870_v47, %v654_v52 }
 0x27e   : > { %v831_v59 = vmul.f32 %v830_v49, %v654_v52  ;;  %v951_v60 = vmul.f32 %v950_v50, %v654_v52  ;;  %v911_v61 = vmul.f32 %v910_v51, %v654_v52  ;;  %v710_v5 = vperm.slane %v1661_v39, 1 }
 0x27f   : > { %v665_v63 = vmul.f32 1.442695, %v664_v55  ;;  %v752_v1 = vmul.f32 1.442695, %v751_v56  ;;  %v872_v2 = vmul.f32 1.442695, %v871_v57  ;;  %v878_v3 = vmul.f32 %v876_v36, %v656_v54 }
 0x280   : > { %v832_v7 = vmul.f32 1.442695, %v831_v59  ;;  %v838_v9 = vmul.f32 %v836_v62, %v656_v54  ;;  %v1674_v10 = vmul.f32 %v956_v4, %v656_v54  ;;  %v952_v11 = vmul.f32 1.442695, %v951_v60 }
 0x281   : > { %1348 = vpow2.f32 %v665_v63  ;;  %v1678_v12 = vmul.f32 %v916_v6, %v656_v54  ;;  %v912_v14 = vmul.f32 1.442695, %v911_v61  ;;  %v879_v16 = vrot.slane %v878_v3, 7 }
 0x282   : > { %1350 = vpow2.f32 %v752_v1  ;;  %v671_v18 = vmul.f32 %v1650_v25, %v656_v54  ;;  %v839_v19 = vrot.slane %v838_v9, 7  ;;  %v959_v20 = vrot.slane %v1674_v10, 7 }
 0x283   : > { %1352 = vpow2.f32 %v872_v2  ;;  %v711_v21 = vmul.f32 %v710_v5, %v654_v52  ;;  %v919_v22 = vrot.slane %v1678_v12, 7  ;;  %v1688_v24 = vmul.f32 %v1652_v29, %v656_v54 }
 0x284   : > { %1354 = vpow2.f32 %v832_v7  ;;  %v672_v23 = vrot.slane %v671_v18, 7  ;;  %v1692_v25 = vmul.f32 %v1654_v30, %v656_v54  ;;  %v880_v31 = vsel %vm660_vm14, %v879_v16, 0.0 }
 0x285   : > { %1356 = vpow2.f32 %v952_v11  ;;  %v712_v27 = vmul.f32 1.442695, %v711_v21  ;;  %v719_v34 = vrot.slane %v1688_v24, 7  ;;  %v840_v35 = vsel %vm660_vm14, %v839_v19, 0.0 }
 0x286   : > { %1358 = vpow2.f32 %v912_v14  ;;  %v675_v33 = vsel %vm660_vm14, %v672_v23, 0.0  ;;  %v960_v30 = vsel %vm660_vm14, %v959_v20, 0.0  ;;  %v920_v40 = vsel %vm660_vm14, %v919_v22, 0.0 }
 0x287   : > { %v1349_v28 = vpop.eup %1348  ;;  %1360 = vpow2.f32 %v712_v27  ;;  %v1708_v41 = vmul.f32 %v790_v15, %v654_v52  ;;  %v1711_v42 = vmul.f32 %v1656_v38, %v656_v54  ;;  %v1717_v46 = vsel %vm660_vm14, %v719_v34, 0.0 }
 0x288   : > { %v1700_v29 = vpop.eup %1350  ;;  %v676_v36 = vmul.f32 %v1349_v28, %v675_v33  ;;  %v678_v37 = vrot.slane %v1349_v28, 7  ;;  %v759_v47 = vrot.slane %v1692_v25, 7 }
 0x289   : > { %v1353_v39 = vpop.eup %1352  ;;  %v763_v52 = vrot.slane %v1700_v29, 7 }
 0x28a   : > { %v1355_v43 = vpop.eup %1354  ;;  %v881_v44 = vmul.f32 %v1353_v39, %v880_v31  ;;  %v679_v45 = vsel %vm660_vm14, %v678_v37, 1.0  ;;  %v883_v49 = vrot.slane %v1353_v39, 7  ;;  %v677_v57 = vadd.f32 %v676_v36, %v671_v18 }
 0x28b   : > { %v1357_v48 = vpop.eup %1356  ;;  %v841_v50 = vmul.f32 %v1355_v43, %v840_v35  ;;  %v843_v51 = vrot.slane %v1355_v43, 7  ;;  %v1726_v62 = vmul.f32 %v1349_v28, %v679_v45 }
 0x28c   : > { %v1359_v55 = vpop.eup %1358  ;;  %v1721_v38 = vadd.f32 %v881_v44, %v878_v3  ;;  %v961_v54 = vmul.f32 %v1357_v48, %v960_v30  ;;  %v963_v56 = vrot.slane %v1357_v48, 7  ;;  %v884_v6 = vsel %vm660_vm14, %v883_v49, 1.0 }
 0x28d   : > { %v842_v59 = vadd.f32 %v841_v50, %v838_v9  ;;  %v844_v60 = vsel %vm660_vm14, %v843_v51, 1.0  ;;  %v921_v61 = vmul.f32 %v1359_v55, %v920_v40  ;;  %v1732_v4 = vpop.eup %1360  ;;  %v923_v5 = vrot.slane %v1359_v55, 7 }
 0x28e   : > { %v886_v63 = vrot.slane %v1721_v38, 6  ;;  %v845_v1 = vmul.f32 %v1355_v43, %v844_v60  ;;  %v962_v2 = vadd.f32 %v961_v54, %v1674_v10  ;;  %v964_v3 = vsel %vm660_vm14, %v963_v56, 1.0 }
 0x28f   : > { %v846_v7 = vrot.slane %v842_v59, 6  ;;  %v965_v9 = vmul.f32 %v1357_v48, %v964_v3  ;;  %v922_v16 = vadd.f32 %v921_v61, %v1678_v12  ;;  %v924_v19 = vsel %vm660_vm14, %v923_v5, 1.0 }
 0x290   : > { %v887_v11 = vsel %vm661_vm15, %v886_v63, 0.0  ;;  %v850_v14 = vrot.slane %v845_v1, 6  ;;  %v966_v15 = vrot.slane %v962_v2, 6  ;;  %v681_v20 = vrot.slane %v677_v57, 6 }
 0x291   : > { %v847_v10 = vsel %vm661_vm15, %v846_v7, 0.0  ;;  %v970_v18 = vrot.slane %v965_v9, 6  ;;  %v925_v27 = vmul.f32 %v1359_v55, %v924_v19  ;;  %v1747_v28 = vmul.f32 %v1353_v39, %v884_v6 }
 0x292   : > { %v848_v21 = vmul.f32 %v847_v10, %v845_v1  ;;  %v851_v22 = vsel %vm661_vm15, %v850_v14, 1.0  ;;  %v967_v23 = vsel %vm661_vm15, %v966_v15, 0.0  ;;  %v926_v30 = vrot.slane %v922_v16, 6 }
 0x293   : > { %v852_v31 = vmul.f32 %v851_v22, %v845_v1  ;;  %v968_v12 = vmul.f32 %v967_v23, %v965_v9  ;;  %v971_v33 = vsel %vm661_vm15, %v970_v18, 1.0  ;;  %v930_v36 = vrot.slane %v925_v27, 6 }
 0x294   : > { %v849_v34 = vadd.f32 %v848_v21, %v842_v59  ;;  %v972_v35 = vmul.f32 %v971_v33, %v965_v9  ;;  %v888_v37 = vmul.f32 %v887_v11, %v1747_v28  ;;  %v684_v44 = vsel %vm661_vm15, %v681_v20, 0.0 }
 0x295   : > { %v857_v40 = vrot.slane %v852_v31, 4  ;;  %v969_v43 = vadd.f32 %v968_v12, %v962_v2  ;;  %v927_v48 = vsel %vm661_vm15, %v926_v30, 0.0  ;;  %v931_v49 = vsel %vm661_vm15, %v930_v36, 1.0 }
 0x296   : > { %v853_v45 = vrot.slane %v849_v34, 4  ;;  %v977_v39 = vrot.slane %v972_v35, 4  ;;  %v928_v55 = vmul.f32 %v927_v48, %v925_v27  ;;  %v932_v54 = vmul.f32 %v931_v49, %v925_v27 }
 0x297   : > { %v858_v50 = vsel %vm662_vm1, %v857_v40, 1.0  ;;  %v973_v51 = vrot.slane %v969_v43, 4  ;;  %v685_v61 = vmul.f32 %v684_v44, %v1726_v62  ;;  %v687_v10 = vrot.slane %v1726_v62, 6 }
 0x298   : > { %v854_v56 = vsel %vm662_vm1, %v853_v45, 0.0  ;;  %v859_v59 = vmul.f32 %v858_v50, %v852_v31  ;;  %v978_v60 = vsel %vm662_vm1, %v977_v39, 1.0  ;;  %v929_v3 = vadd.f32 %v928_v55, %v922_v16 }
 0x299   : > { %v855_v63 = vmul.f32 %v854_v56, %v852_v31  ;;  %v974_v1 = vsel %vm662_vm1, %v973_v51, 0.0  ;;  %v979_v2 = vmul.f32 %v978_v60, %v972_v35  ;;  %v937_v9 = vrot.slane %v932_v54, 4  ;;  %v1827_v60 = vpop.permute.xlu2 %705 }
 0x29a   : > { %v861_v6 = vmul.f32 %v860_v13, %v859_v59  ;;  %v975_v7 = vmul.f32 %v974_v1, %v972_v35  ;;  %v686_v5 = vadd.f32 %v685_v61, %v677_v57  ;;  %v933_v15 = vrot.slane %v929_v3, 4 }
 0x29b   : > { %v856_v11 = vadd.f32 %v855_v63, %v849_v34  ;;  %v981_v14 = vmul.f32 %v980_v17, %v979_v2  ;;  %v938_v19 = vsel %vm662_vm1, %v937_v9, 1.0  ;;  %v721_v16 = vmul.f32 %v1732_v4, %v1717_v46 }
 0x29c   : > { %v976_v18 = vadd.f32 %v975_v7, %v969_v43  ;;  %v690_v20 = vrot.slane %v686_v5, 4  ;;  %v934_v13 = vsel %vm662_vm1, %v933_v15, 0.0  ;;  %v939_v57 = vmul.f32 %v938_v19, %v932_v54 }
 0x29d   : > { %v1776_v21 = vadd.f32 %v861_v6, %v856_v11  ;;  %v688_v17 = vsel %vm661_vm15, %v687_v10, 1.0  ;;  %v935_v23 = vmul.f32 %v934_v13, %v932_v54  ;;  %v722_v12 = vadd.f32 %v721_v16, %v1688_v24 }
 0x29e   : > { %v1782_v22 = vadd.f32 %v981_v14, %v976_v18  ;;  %v689_v27 = vmul.f32 %v688_v17, %v1726_v62  ;;  %v693_v31 = vsel %vm662_vm1, %v690_v20, 0.0  ;;  %v941_v46 = vmul.f32 %v940_v26, %v939_v57  ;;  %v993_v14 = vld [vmem:[%s1993_s9 + $0x18] sm:$0xff]  ;;  %v992_v20 = vld [vmem:[%s1993_s9 + $0x10] sm:$0xff] }
 0x29f   : > { %863 = vst.msk [vmem:[#allocation3 - $0x3] sm:$0x80] %vm702_vm2, %v1776_v21  ;;  %v723_v33 = vrot.slane %v1732_v4, 7  ;;  %v792_v34 = vmul.f32 1.442695, %v1708_v41  ;;  %v936_v35 = vadd.f32 %v935_v23, %v929_v3  ;;  %v760_v36 = vsel %vm660_vm14, %v759_v47, 0.0  ;;  %1009 = vmatpush.msrb.mxu2 %v993_v14 }
 0x2a0   : > { %983 = vst.msk [vmem:[#allocation3] sm:$0x80] %vm702_vm2, %v1782_v22  ;;  %v694_v62 = vmul.f32 %v693_v31, %v689_v27  ;;  %v696_v30 = vrot.slane %v689_v27, 4  ;;  %v1801_v40 = vadd.f32 %v888_v37, %v1721_v38  ;;  %v726_v26 = vrot.slane %v722_v12, 6 }
 0x2a1   : > { %v724_v24 = vsel %vm660_vm14, %v723_v33, 1.0  ;;  %v761_v41 = vmul.f32 %v1700_v29, %v760_v36  ;;  %v1806_v43 = vadd.f32 %v941_v46, %v936_v35  ;;  %v764_v37 = vsel %vm660_vm14, %v763_v52, 1.0  ;;  %1010 = vmatpush.msrb.mxu2 %v992_v20 }
 0x2a2   : > { %v695_v44 = vadd.f32 %v694_v62, %v686_v5  ;;  %v697_v45 = vsel %vm662_vm1, %v696_v30, 1.0  ;;  %v725_v39 = vmul.f32 %v1732_v4, %v724_v24  ;;  %v727_v47 = vsel %vm661_vm15, %v726_v26, 0.0  ;;  %v990_v30 = vld [vmem:[%s1993_s9] sm:$0xff] }
 0x2a3   : > { %v698_v48 = vmul.f32 %v697_v45, %v689_v27  ;;  %v762_v38 = vadd.f32 %v761_v41, %v1692_v25  ;;  %943 = vst.msk [vmem:[#allocation3 - $0x1] sm:$0x80] %vm702_vm2, %v1806_v43  ;;  %v765_v51 = vmul.f32 %v1700_v29, %v764_v37  ;;  %1362 = vpow2.f32 %v792_v34 }
 0x2a4   : > { %v728_v49 = vmul.f32 %v727_v47, %v725_v39  ;;  %v730_v50 = vrot.slane %v725_v39, 6  ;;  %v799_v54 = vrot.slane %v1711_v42, 7  ;;  %v893_v25 = vrot.slane %v1801_v40, 4 }
 0x2a5   : > { %v700_v4 = vmul.f32 %v699_v32, %v698_v48  ;;  %v766_v55 = vrot.slane %v762_v38, 6  ;;  %v770_v59 = vrot.slane %v765_v51, 6  ;;  %v890_v32 = vrot.slane %v1747_v28, 6 }
 0x2a6   : > { %v729_v56 = vadd.f32 %v728_v49, %v722_v12  ;;  %v731_v52 = vsel %vm661_vm15, %v730_v50, 1.0  ;;  %v740_v1 = vperm.slane %v1672_v58, 1  ;;  %v780_v9 = vperm.slane %v1672_v58, 2 }
 0x2a7   : > { %v1829_v61 = vadd.f32 %v700_v4, %v695_v44  ;;  %v732_v63 = vmul.f32 %v731_v52, %v725_v39  ;;  %v767_v29 = vsel %vm661_vm15, %v766_v55, 0.0  ;;  %v771_v6 = vsel %vm661_vm15, %v770_v59, 1.0  ;;  %v746_v44 = vpop.permute.xlu1 %745 }
 0x2a8   : > { %v733_v2 = vrot.slane %v729_v56, 4  ;;  %v768_v3 = vmul.f32 %v767_v29, %v765_v51  ;;  %v772_v5 = vmul.f32 %v771_v6, %v765_v51  ;;  %v891_v11 = vsel %vm661_vm15, %v890_v32, 1.0  ;;  %v786_v51 = vpop.permute.xlu2 %785 }
 0x2a9   : > { %703 = vst.msk [vmem:[#allocation3 - $0x7] sm:$0x80] %vm702_vm2, %v1829_v61  ;;  %v737_v7 = vrot.slane %v732_v63, 4  ;;  %v892_v18 = vmul.f32 %v891_v11, %v1747_v28  ;;  %v894_v19 = vsel %vm662_vm1, %v893_v25, 0.0  ;;  %v1363_v16 = vpop.eup %1362  ;;  %v800_v23 = vsel %vm660_vm14, %v799_v54, 0.0  ;;  %v991_v28 = vld [vmem:[%s1993_s9 + $0x8] sm:$0xff] }
 0x2aa   : > { %v734_v15 = vsel %vm662_vm1, %v733_v2, 0.0  ;;  %v769_v10 = vadd.f32 %v768_v3, %v762_v38  ;;  %v777_v17 = vrot.slane %v772_v5, 4  ;;  %v801_v46 = vmul.f32 %v1363_v16, %v800_v23  ;;  %1011 = vmatpush.msrb.mxu2 %v991_v28 }
 0x2ab   : > { %v735_v13 = vmul.f32 %v734_v15, %v732_v63  ;;  %v738_v57 = vsel %vm662_vm1, %v737_v7, 1.0  ;;  %v803_v12 = vrot.slane %v1363_v16, 7  ;;  %v895_v35 = vmul.f32 %v894_v19, %v892_v18 }
 0x2ac   : > { %v739_v27 = vmul.f32 %v738_v57, %v732_v63  ;;  %v773_v31 = vrot.slane %v769_v10, 4  ;;  %v778_v34 = vsel %vm662_vm1, %v777_v17, 1.0  ;;  %v897_v62 = vrot.slane %v892_v18, 4  ;;  %1012 = vmatpush.msrb.mxu2 %v990_v30 }
 0x2ad   : > { %v736_v33 = vadd.f32 %v735_v13, %v729_v56  ;;  %v779_v26 = vmul.f32 %v778_v34, %v772_v5  ;;  %v802_v41 = vadd.f32 %v801_v46, %v1711_v42  ;;  %v804_v39 = vsel %vm660_vm14, %v803_v12, 1.0  ;;  %v986_v46 = vpop.permute.xlu0 %985 }
 0x2ae   : > { %v741_v36 = vmul.f32 %v740_v1, %v739_v27  ;;  %v774_v24 = vsel %vm662_vm1, %v773_v31, 0.0  ;;  %v900_v48 = vperm.slane %v1672_v58, 5  ;;  %v898_v47 = vsel %vm662_vm1, %v897_v62, 1.0 }
 0x2af   : > { %v775_v45 = vmul.f32 %v774_v24, %v772_v5  ;;  %v781_v37 = vmul.f32 %v780_v9, %v779_v26  ;;  %v805_v49 = vmul.f32 %v1363_v16, %v804_v39  ;;  %v806_v50 = vrot.slane %v802_v41, 6  ;;  %v826_v9 = vpop.permute.xlu1 %825 }
 0x2b0   : > { %v742_v38 = vadd.f32 %v741_v36, %v736_v33  ;;  %v896_v42 = vadd.f32 %v895_v35, %v1801_v40  ;;  %v899_v55 = vmul.f32 %v898_v47, %v892_v18  ;;  %v708_v40 = vmul.f32 %v1827_v60, %v1829_v61  ;;  %v866_v18 = vpop.permute.xlu2 %865 }
 0x2b1   : > { %v776_v4 = vadd.f32 %v775_v45, %v769_v10  ;;  %v807_v54 = vsel %vm661_vm15, %v806_v50, 0.0  ;;  %v810_v25 = vrot.slane %v805_v49, 6  ;;  %v820_v7 = vperm.slane %v1672_v58, 3 }
 0x2b2   : > { %743 = vst.msk [vmem:[#allocation3 - $0x6] sm:$0x80] %vm702_vm2, %v742_v38  ;;  %v808_v52 = vmul.f32 %v807_v54, %v805_v49  ;;  %v901_v59 = vmul.f32 %v900_v48, %v899_v55  ;;  %v748_v2 = vmul.f32 %v746_v44, %v742_v38  ;;  %v868_v58 = vmul.f32 %v866_v18, %v1776_v21  ;;  %v1049_v44 = vld [vmem:[%s1996_s12] sm:$0xff] }
 0x2b3   : > { %v782_v56 = vadd.f32 %v781_v37, %v776_v4  ;;  %v811_v63 = vsel %vm661_vm15, %v810_v25, 1.0  ;;  %v988_v33 = vmul.f32 %v986_v46, %v1782_v22  ;;  %v1052_v22 = vld [vmem:[%s1996_s12 + $0x18] sm:$0xff]  ;;  %v1334_v4 = vld [vmem:[%s1994_s10] ss:$0 sm:$0xff] }
 0x2b4   : > { %v809_v29 = vadd.f32 %v808_v52, %v802_v41  ;;  %v812_v32 = vmul.f32 %v811_v63, %v805_v49  ;;  %v902_v1 = vadd.f32 %v901_v59, %v896_v42  ;;  %v749_v14 = vadd.f32 %v748_v2, %v708_v40  ;;  %1068 = vmatpush.msra.mxu3 %v1052_v22  ;;  %v1050_v41 = vld [vmem:[%s1996_s12 + $0x8] sm:$0xff]  ;;  %v1102_v52 = vld [vmem:[%s1997_s13 + $0x30] sm:$0xff] }
 0x2b5   : > { %783 = vst.msk [vmem:[#allocation3 - $0x5] sm:$0x80] %vm702_vm2, %v782_v56  ;;  %v788_v19 = vmul.f32 %v786_v51, %v782_v56  ;;  %v1103_v56 = vld [vmem:[%s1997_s13 + $0x38] sm:$0xff]  ;;  %v1101_v59 = vld [vmem:[%s1997_s13 + $0x28] sm:$0xff] }
 0x2b6   : > { %v813_v3 = vrot.slane %v809_v29, 4  ;;  %v817_v6 = vrot.slane %v812_v32, 4  ;;  %903 = vst.msk [vmem:[#allocation3 - $0x2] sm:$0x80] %vm702_vm2, %v902_v1  ;;  %1121 = vmatpush.msra.mxu1 %v1103_v56  ;;  %v1097_v40 = vld [vmem:[%s1997_s13 + $0x8] sm:$0xff] }
 0x2b7   : > { %v789_v20 = vadd.f32 %v788_v19, %v749_v14  ;;  %v906_v17 = vpop.permute.xlu1 %905 }
 0x2b8   : > { %v814_v5 = vsel %vm662_vm1, %v813_v3, 0.0  ;;  %v818_v11 = vsel %vm662_vm1, %v817_v6, 1.0  ;;  %v908_v28 = vmul.f32 %v906_v17, %v902_v1  ;;  %v946_v53 = vpop.permute.xlu2 %945  ;;  %1122 = vmatpush.msra.mxu1 %v1102_v52  ;;  %v1098_v1 = vld [vmem:[%s1997_s13 + $0x10] sm:$0xff] }
 0x2b9   : > { %v815_v15 = vmul.f32 %v814_v5, %v812_v32  ;;  %v819_v10 = vmul.f32 %v818_v11, %v812_v32  ;;  %v948_v27 = vmul.f32 %v946_v53, %v1806_v43  ;;  %v1099_v32 = vld [vmem:[%s1997_s13 + $0x18] sm:$0xff] }
 0x2ba   : > { %1123 = vmatpush.msra.mxu1 %v1101_v59 }
 0x2bb   : > { %v816_v60 = vadd.f32 %v815_v15, %v809_v29  ;;  %v821_v61 = vmul.f32 %v820_v7, %v819_v10  ;;  %v1100_v29 = vld [vmem:[%s1997_s13 + $0x20] sm:$0xff] }
 0x2bc   : > { %1124 = vmatpush.msra.mxu1 %v1100_v29  ;;  %v1096_v7 = vld [vmem:[%s1997_s13] sm:$0xff] }
 0x2bd   : > { %v822_v16 = vadd.f32 %v821_v61, %v816_v60 }
 0x2be   : > { %1125 = vmatpush.msra.mxu1 %v1099_v32 }
 0x2bf   : > { %823 = vst.msk [vmem:[#allocation3 - $0x4] sm:$0x80] %vm702_vm2, %v822_v16  ;;  %v828_v13 = vmul.f32 %v826_v9, %v822_v16 }
 0x2c0   : > { %1126 = vmatpush.msra.mxu1 %v1098_v1 }
 0x2c1   : > { %v829_v57 = vadd.f32 %v828_v13, %v789_v20 }
 0x2c2   : > { %1127 = vmatpush.msra.mxu1 %v1097_v40 }
 0x2c3   : > { %v869_v23 = vadd.f32 %v868_v58, %v829_v57 }
 0x2c4   : > { %1128 = vmatpush.msra.mxu1 %v1096_v7 }
 0x2c5   : > { %v909_v31 = vadd.f32 %v908_v28, %v869_v23 }
 0x2c7   : > { %v949_v12 = vadd.f32 %v948_v27, %v909_v31 }
 0x2c9   : > { %v989_v34 = vadd.f32 %v988_v33, %v949_v12 }
 0x2cb   : > { %1232 = vmatmul.msk.f32.vlgmr.msrb.gmra.mxu2 %vm492_vm0, %v989_v34 }
 0x34e   : > { %v1014_v35 = vpop.f32.mrf.mxu2 }
 0x34f   : > { %v1894_v62 = vadd.f32 %v1014_v35, %v1604_v0  ;;  %v1051_v0 = vld [vmem:[%s1996_s12 + $0x10] sm:$0xff] }
 0x350   : > { %1069 = vmatpush.msra.mxu3 %v1051_v0 }
 0x351   : > { %v1019_v21 = vsel %vm492_vm0, %v1894_v62, 0.0 }
 0x352   : > { %1020 = vadd.xlane.f32.xlu1 %v1019_v21  ;;  %1070 = vmatpush.msra.mxu3 %v1050_v41 }
 0x354   : > { %1071 = vmatpush.msra.mxu3 %v1049_v44 }
 0x3c5   : > { %v1021_v30 = vpop.xlane.xlu1 %1020 }
 0x3c6   : > { %v1022_v36 = vmul.f32 %v1021_v30, %v1608_v8 }
 0x3c8   : > { %v1023_v43 = vsub.f32 %v1894_v62, %v1022_v36 }
 0x3ca   : > { %v1024_v24 = vmul.f32 %v1023_v43, %v1023_v43 }
 0x3cc   : > { %v1025_v26 = vsel %vm492_vm0, %v1024_v24, 0.0 }
 0x3cd   : > { %1026 = vadd.xlane.f32.xlu2 %v1025_v26 }
 0x440   : > { %v1027_v45 = vpop.xlane.xlu2 %1026 }
 0x441   : > { %v1028_v39 = vmul.f32 %v1027_v45, %v1608_v8  ;;  %v1335_v8 = vld [vmem:[%s1995_s11] ss:$0 sm:$0xff] }
 0x443   : > { %v1029_v48 = vadd.f32 1e-05, %v1028_v39 }
 0x445   : > { %1364 = vrsqrt.f32 %v1029_v48  ;;  %vm1036_vm4 = vweird.f32 %v1029_v48 }
 0x44b   : > { %v1365_v47 = vpop.eup %1364 }
 0x44c   : > { %v1031_v38 = vmul.f32 %v1365_v47, %v1029_v48  ;;  %vm1037_vm3 = vweird.f32 %v1365_v47 }
 0x44d   : > { %vm1038_vm5 = vmor %vm1036_vm4, %vm1037_vm3 }
 0x44e   : > { %v1032_v37 = vmul.f32 %v1365_v47, %v1031_v38 }
 0x450   : > { %v1033_v49 = vmul.f32 0.5, %v1032_v37 }
 0x452   : > { %v1034_v50 = vsub.f32 1.5, %v1033_v49 }
 0x454   : > { %v1035_v51 = vmul.f32 %v1365_v47, %v1034_v50 }
 0x456   : > { %v1039_v42 = vsel %vm1038_vm5, %v1365_v47, %v1035_v51 }
 0x457   : > { %v1040_v55 = vmul.f32 %v1039_v42, %v1023_v43 }
 0x459   : > { %v1044_v54 = vmul.f32 %v1334_v4, %v1040_v55 }
 0x45b   : > { %v1048_v25 = vadd.f32 %v1335_v8, %v1044_v54 }
 0x45d   : > { %1233 = vmatmul.msk.f32.vlgmr.msra.gmra.mxu3 %vm492_vm0, %v1048_v25 }
 0x4e0   : > { %v1073_v63 = vpop.f32.mrf.mxu3 }
 0x4e1   : > { %1105 = vrot.lane.b32.xlu0 %v1073_v63, %s1468_s0  ;;  %v1234_v2 = vmul.f32 -1.442695, %v1073_v63  ;;  %s1150_s0 = sshll.u32 %s1146_s24, 4  ;;  %s1151_s0 = int_to_ptr.hbm [resolvable:$true] %s1150_s0 }
 0x4e2   : > { %s1384_s3 = sshra.s32 %s1151_s0, 4  ;;  %s1385_s3 = int_to_ptr.hbm [resolvable:$true] %s1384_s3 }
 0x4e3   : > { %1366 = vpow2.f32 %v1234_v2  ;;  %s1386_s4 = scalar_lea.hbm %s1385_s3, 8  ;;  %p1391_p1 = scmp.lt.s32.totalorder %s1385_s3, %s1998_s14 }
 0x4e4   : > { %p1387_p12 = scmp.ne.s32.totalorder %s1385_s3, %s1386_s4  ;;  %p1392_p2 = scmp.lt.s32.totalorder %s1390_s19, %s1386_s4 }
 0x4e6   : > { %p1388_p13 = pnand %p1387_p12, %p1584_p4  ;;  %p1393_p3 = por %p1392_p2, %p1391_p1 }
 0x4e8   : > { %p1389_p0 = pneg %p1388_p13 }
 0x4e9   : > { %v1367_v3 = vpop.eup %1366 }
 0x4ea   : > { %v1079_v6 = vadd.f32 1.0, %v1367_v3  ;;  %p1394_p5 = pnand %p1393_p3, %p1389_p0 }
 0x4ec   : > { %1368 = vrcp.f32 %v1079_v6  ;;  %v1091_v10 = vand.u32 2147483648, %v1079_v6  ;;  %vm1085_vm7 = vweird.f32 %v1079_v6  ;;  %v1089_v18 = vand.u32 2147483647, %v1079_v6 }
 0x4ee   : > { %v1092_v60 = vor.u32 1.1754944e-38, %v1091_v10  ;;  %vm1090_vm9 = vcmp.eq.f32.partialorder %v1089_v18, 8.507059e+37 }
 0x4f2   : > { %v1369_v9 = vpop.eup %1368 }
 0x4f3   : > { %v1081_v5 = vmul.f32 %v1369_v9, %v1079_v6  ;;  %vm1086_vm6 = vweird.f32 %v1369_v9 }
 0x4f4   : > { %vm1087_vm8 = vmor %vm1085_vm7, %vm1086_vm6 }
 0x4f5   : > { %v1082_v11 = vsub.f32 1.0, %v1081_v5 }
 0x4f7   : > { %v1083_v14 = vmul.f32 %v1369_v9, %v1082_v11 }
 0x4f9   : > { %v1084_v15 = vadd.f32 %v1369_v9, %v1083_v14 }
 0x4fb   : > { %v1088_v19 = vsel %vm1087_vm8, %v1369_v9, %v1084_v15 }
 0x4fc   : > { %v1093_v61 = vsel %vm1090_vm9, %v1092_v60, %v1088_v19 }
 0x4fd   : > { %v1095_v20 = vmul.f32 %v1093_v61, %v1073_v63 }
 0x553   : > { %v1106_v16 = vpop.permute.xlu0 %1105 }
 0x554   : > { %v1108_v13 = vmul.f32 %v1106_v16, %v1095_v20 }
 0x556   : > { %1235 = vmatmul.msk.f32.vlgmr.msra.gmra.mxu1 %vm1109_vm10, %v1108_v13 }
 0x5d3   : > { %v1130_v58 = vpop.f32.mrf.mxu1 }
 0x5d4   : > { %v1131_v57 = vadd.f32 %v1130_v58, %v1894_v62 }
 0x5d6   : > { %1133 = vst.msk [vmem:[%s480_s27] sm:$0xff] %vm492_vm0, %v1131_v57 }
 0x5d7   : > { %1397 = shalt.err (!%p1394_p5)
}
 0x5d8   : > { %1240 = dma.vmem_to_hbm [thread:$0]  (%p1584_p4), %s1149_s1, 128, %s1151_s0, %s1135_s2  }
 0x5d9 PF: > { %p1246_p6 = scmp.ge.s32.totalorder %s1448_s18, 2  ;;  %s1162_s28 = sand.u32 1, %s1428_s29  }
 0x5da   : > { %s1163_s24 = scalar_lea.sflag [#allocation5], %s1162_s28 }
 0x5db   : > { %p1243_p7 = pnand %p1246_p6, %p1591_p8 }
 0x5dd   : > { %p1244_p9 = pneg %p1243_p7 }
 0x5df   : > { %1423 = dma.done.wait (%p1244_p9), %s1163_s24, 128  }
 0x5e0   : > { %1425 = vsyncadd (%p1244_p9), %s1163_s24, 4294967168  ;;  %s27_s18 = sadd.s32 1, %s1448_s18   ;;  %s2013_s2 = sld [smem:[#allocation7_spill]] }
 0x5e1   : > { %p24_p10 = scmp.ge.s32.totalorder %s27_s18, 4   ;;  %s2014_s29 = smov %s1432_s30 }
 0x5e2   : > { %s2015_s30 = smov %s1436_s15  ;;  %s2016_s15 = smov %s1597_s26 }
 0x5e3   : > { %s2017_s16 = smov %s1444_s17  ;;  %26 = sbr.rel (!%p24_p10) target bundleno = 10 (0xa), region = 115 }
 0x5e6   : > { %s2018_s17 = smov %s2013_s2 }
 0x5e8   :  { %1169 = vsyncpa [#allocation5], 1 }
 0x5e9   :  { %1171 = vsyncpa [#allocation5 + $0x1], 1 }

</bundles_post_ra>
